<compile_context>
chip_gen: v6e
topology: v6e:2x2x1
jax: 0.10.0
libtpu: 0.0.40
codegen_flags: <defaults>
</compile_context>

<pallas_src>
import functools

import jax
import jax.numpy as jnp
from jax.experimental import pallas as pl
from jax.experimental.pallas import tpu as pltpu


def transformer_block_kernel(x_tile_ref, x_full_ref,
                             ln1_w_ref, ln1_b_ref,
                             wqkv_ref, bqkv_ref,
                             wo_ref, bo_ref,
                             ln2_w_ref, ln2_b_ref,
                             w1_ref, b1_ref, w2_ref, b2_ref,
                             o_ref,
                             k_hm_ref, v_hm_ref, q_hm_ref, ctx_ref,
                             *, num_heads, eps):
    qt = pl.program_id(1)
    bf16 = jnp.bfloat16
    f32 = jnp.float32

    x_tile = x_tile_ref[0].astype(f32)            # (TQ, D) query / residual tile
    TQ, D = x_tile.shape
    H = num_heads
    hd = D // H
    n_kt = k_hm_ref.shape[0]                      # number of KV tiles (= T // TQ)

    ln1_w = ln1_w_ref[...]                        # (1, D)
    ln1_b = ln1_b_ref[...]
    bqkv = bqkv_ref[...]                          # (1, 3D)

    def layer_norm(v, w, b):                      # f32 statistics
        mu = jnp.mean(v, axis=-1, keepdims=True)
        var = jnp.mean((v - mu) ** 2, axis=-1, keepdims=True)
        return (v - mu) * jax.lax.rsqrt(var + eps) * w + b

    # ---- K/V projection: once per batch element (qt == 0), cached head-major ----
    @pl.when(qt == 0)
    def _build_kv_cache():
        x_full = x_full_ref[0].astype(f32)                         # (T, D)
        xn_kv = layer_norm(x_full, ln1_w, ln1_b)
        kv = jnp.dot(xn_kv.astype(bf16), wqkv_ref[:, D:],
                     preferred_element_type=f32) + bqkv[:, D:]     # (T, 2D)
        kv16 = kv.astype(bf16)
        for kt in range(n_kt):
            rs = kt * TQ
            for h in range(H):
                k_hm_ref[kt, h] = kv16[rs:rs + TQ, h * hd:(h + 1) * hd]
                v_hm_ref[kt, h] = kv16[rs:rs + TQ, D + h * hd:D + (h + 1) * hd]

    # ---- sublayer 1: LN1 -> causal MHA (flash over causal extent) -> residual ----
    xn_q = layer_norm(x_tile, ln1_w, ln1_b)
    q = jnp.dot(xn_q.astype(bf16), wqkv_ref[:, :D],
                preferred_element_type=f32) + bqkv[:, :D]          # (TQ, D)
    q16 = q.astype(bf16)
    for h in range(H):                                             # one up-front relayout
        q_hm_ref[h] = q16[:, h * hd:(h + 1) * hd]
    q_hm = q_hm_ref[...]                                           # (H, TQ, hd) bf16

    scale = 1.0 / (hd ** 0.5)
    row = jax.lax.broadcasted_iota(jnp.int32, (TQ, TQ), 0) + qt * TQ   # global query row
    col_local = jax.lax.broadcasted_iota(jnp.int32, (TQ, TQ), 1)

    def kv_step(kt, carry):
        m, l, acc = carry
        k_t = k_hm_ref[kt]                                         # (H, TQ, hd) bf16
        v_t = v_hm_ref[kt]
        s = jnp.einsum("hqd,hkd->hqk", q_hm, k_t,
                       preferred_element_type=f32) * scale         # (H, TQ, TQ)
        col = col_local + kt * TQ                                  # global key col
        bias = jnp.where(col <= row, 0.0, -1e30).astype(f32)       # only diag tile masks
        s = s + bias[None]
        m_new = jnp.maximum(m, jnp.max(s, axis=-1, keepdims=True))
        alpha = jnp.exp(m - m_new)
        p = jnp.exp(s - m_new)
        l_new = alpha * l + jnp.sum(p, axis=-1, keepdims=True)
        acc_new = alpha * acc + jnp.einsum("hqk,hkd->hqd", p.astype(bf16), v_t,
                                           preferred_element_type=f32)
        return m_new, l_new, acc_new

    m0 = jnp.full((H, TQ, 1), -1e30, f32)
    l0 = jnp.zeros((H, TQ, 1), f32)
    acc0 = jnp.zeros((H, TQ, hd), f32)
    _, l, acc = jax.lax.fori_loop(0, qt + 1, kv_step, (m0, l0, acc0))

    ctxv = (acc * pl.reciprocal(l, approx=True)).astype(bf16)      # (H, TQ, hd)
    for h in range(H):
        ctx_ref[:, h * hd:(h + 1) * hd] = ctxv[h]                  # bf16 context scratch

    attn = jnp.dot(ctx_ref[...], wo_ref[...],
                   preferred_element_type=f32) + bo_ref[...]
    # TODO(synk): dropout layers omitted (identity at inference / drop_rate=0).
    x1 = x_tile + attn

    # ---- sublayer 2: LN2 -> FeedForward (GELU MLP) -> residual ----
    xn2 = layer_norm(x1, ln2_w_ref[...], ln2_b_ref[...])
    h1 = jnp.dot(xn2.astype(bf16), w1_ref[...],
                 preferred_element_type=f32) + b1_ref[...]
    h1 = jax.nn.gelu(h1, approximate=True).astype(bf16)            # GPT-2 tanh GELU
    ff = jnp.dot(h1, w2_ref[...], preferred_element_type=f32) + b2_ref[...]

    o_ref[0] = (x1 + ff).astype(o_ref.dtype)


def _pick_q_tile(T, target=256):
    """Largest query/KV tile <= target that divides T (multiple of 8), else T."""
    if T <= target:
        return T
    for cand in range(target, 7, -1):
        if T % cand == 0 and cand % 8 == 0:
            return cand
    return T


def _vmem_limit_bytes():
    """~75% of physical VMEM (96 MB on v5e/v6e, 48 MB on v7x); safe fallback."""
    try:
        return int(0.75 * pltpu.get_tpu_info().vmem_capacity_bytes)
    except Exception:
        return 64 * 1024 * 1024


def transformer_block(x, p, *, num_heads, eps=1e-5):
    B, T, D = x.shape
    F = p["w1"].shape[1]   # 4*D
    H = num_heads
    hd = D // H
    TQ = _pick_q_tile(T)
    n_qt = T // TQ

    def full_spec(shape):
        n = len(shape)
        return pl.BlockSpec(shape, lambda *_, _n=n: (0,) * _n)

    in_specs = [
        pl.BlockSpec((1, TQ, D), lambda b, i: (b, i, 0)),   # x (query/residual tile)
        pl.BlockSpec((1, T, D), lambda b, i: (b, 0, 0)),    # x (full seq, used at qt==0)
        full_spec((1, D)), full_spec((1, D)),               # ln1 w, b
        full_spec((D, 3 * D)), full_spec((1, 3 * D)),       # Wqkv, bqkv
        full_spec((D, D)), full_spec((1, D)),               # Wo, bo
        full_spec((1, D)), full_spec((1, D)),               # ln2 w, b
        full_spec((D, F)), full_spec((1, F)),               # W1, b1
        full_spec((F, D)), full_spec((1, D)),               # W2, b2
    ]

    kernel = functools.partial(transformer_block_kernel,
                               num_heads=H, eps=eps)
    return pl.pallas_call(
        kernel,
        out_shape=jax.ShapeDtypeStruct((B, T, D), x.dtype),
        grid_spec=pltpu.PrefetchScalarGridSpec(
            num_scalar_prefetch=0,
            grid=(B, n_qt),
            in_specs=in_specs,
            out_specs=pl.BlockSpec((1, TQ, D), lambda b, i: (b, i, 0)),
            scratch_shapes=[
                pltpu.VMEM((n_qt, H, TQ, hd), jnp.bfloat16),   # K cache (head-major)
                pltpu.VMEM((n_qt, H, TQ, hd), jnp.bfloat16),   # V cache (head-major)
                pltpu.VMEM((H, TQ, hd), jnp.bfloat16),         # Q (head-major)
                pltpu.VMEM((TQ, D), jnp.bfloat16),             # attention context
            ]),
        compiler_params=pltpu.CompilerParams(
            # qt must be "arbitrary": the KV cache is built at qt==0 and reused.
            dimension_semantics=("parallel", "arbitrary"),
            vmem_limit_bytes=_vmem_limit_bytes()),
    )(x, x,
      p["ln1_w"], p["ln1_b"],
      p["wqkv"], p["bqkv"],
      p["wo"], p["bo"],
      p["ln2_w"], p["ln2_b"],
      p["w1"], p["b1"], p["w2"], p["b2"])


def _mm(a, w):
    """bf16-operand matmul with f32 accumulation (mirrors the kernel's MXU use)."""
    return jnp.dot(a.astype(jnp.bfloat16), w.astype(jnp.bfloat16),
                   preferred_element_type=jnp.float32)


def reference_block(x, p, *, num_heads, eps=1e-5):
    """Pure-JAX reference mirroring the PyTorch forward (eval mode)."""
    def ln(v, w, b):
        mu = v.mean(-1, keepdims=True)
        var = ((v - mu) ** 2).mean(-1, keepdims=True)
        return (v - mu) / jnp.sqrt(var + eps) * w + b

    B, T, D = x.shape
    hd = D // num_heads
    bf16 = jnp.bfloat16

    skip = x
    xn = ln(x, p["ln1_w"][0], p["ln1_b"][0])
    qkv = _mm(xn, p["wqkv"]) + p["bqkv"][0]
    q, k, v = qkv[..., :D], qkv[..., D:2 * D], qkv[..., 2 * D:]
    q = q.reshape(B, T, num_heads, hd).transpose(0, 2, 1, 3)
    k = k.reshape(B, T, num_heads, hd).transpose(0, 2, 1, 3)
    v = v.reshape(B, T, num_heads, hd).transpose(0, 2, 1, 3)
    s = jnp.einsum("bhqd,bhkd->bhqk", q.astype(bf16), k.astype(bf16),
                   preferred_element_type=jnp.float32) / (hd ** 0.5)
    mask = jnp.tril(jnp.ones((T, T), dtype=bool))
    s = jnp.where(mask, s, -1e30)
    patt = jax.nn.softmax(s, axis=-1)
    ctx = jnp.einsum("bhqk,bhkd->bhqd", patt.astype(bf16), v.astype(bf16),
                     preferred_element_type=jnp.float32)
    ctx = ctx.transpose(0, 2, 1, 3).reshape(B, T, D)
    x = skip + (_mm(ctx, p["wo"]) + p["bo"][0])

    skip = x
    xn2 = ln(x, p["ln2_w"][0], p["ln2_b"][0])
    h1 = jax.nn.gelu(_mm(xn2, p["w1"]) + p["b1"][0], approximate=True)
    return skip + (_mm(h1, p["w2"]) + p["b2"][0])


def make_params(key, D, F):
    ks = jax.random.split(key, 8)

    def nrm(k, shape, s=0.02, dtype=jnp.float32):
        return (s * jax.random.normal(k, shape)).astype(dtype)

    bf = jnp.bfloat16
    return {
        "ln1_w": 1.0 + nrm(ks[0], (1, D), 0.1), "ln1_b": nrm(ks[1], (1, D), 0.1),
        "wqkv": nrm(ks[2], (D, 3 * D), dtype=bf), "bqkv": nrm(ks[3], (1, 3 * D)),
        "wo":   nrm(ks[4], (D, D), dtype=bf),     "bo":   jnp.zeros((1, D), jnp.float32),
        "ln2_w": 1.0 + nrm(ks[5], (1, D), 0.1),   "ln2_b": jnp.zeros((1, D), jnp.float32),
        "w1":   nrm(ks[6], (D, F), dtype=bf),     "b1":   jnp.zeros((1, F), jnp.float32),
        "w2":   nrm(ks[7], (F, D), dtype=bf),     "b2":   jnp.zeros((1, D), jnp.float32),
    }


if __name__ == "__main__":
    # cfg: embed_dim=32, num_attention_heads=4, context_length=8, drop_rate=0.0, qkv_bias=True
    # NOTE: this config is far below one (8,128) vreg tile -- correctness check only,
    # not a performance-representative shape.
    B, T, D, H = 2, 8, 32, 4
    F = 4 * D

    key = jax.random.PRNGKey(0)
    kx, kp = jax.random.split(key)
    x = jax.random.normal(kx, (B, T, D), dtype=jnp.float32)
    params = make_params(kp, D, F)

    out = jax.block_until_ready(transformer_block(x, params, num_heads=H))
    ref = jax.block_until_ready(reference_block(x, params, num_heads=H))

    assert out.shape == (B, T, D)
    assert jnp.allclose(out, ref, rtol=2e-3, atol=2e-3), "mismatch vs reference"

    print("KERNEL_OK")
</pallas_src>

<mosaic_0001>
module attributes {stable_mosaic.version = 11 : i64} {
  func.func @transformer_block_kernel(%arg0: i32, %arg1: i32, %arg2: memref<1x8x32xf32, #tpu.memory_space<vmem>>, %arg3: memref<1x8x32xf32, #tpu.memory_space<vmem>>, %arg4: memref<1x32xf32, #tpu.memory_space<vmem>>, %arg5: memref<1x32xf32, #tpu.memory_space<vmem>>, %arg6: memref<32x96xbf16, #tpu.memory_space<vmem>>, %arg7: memref<1x96xf32, #tpu.memory_space<vmem>>, %arg8: memref<32x32xbf16, #tpu.memory_space<vmem>>, %arg9: memref<1x32xf32, #tpu.memory_space<vmem>>, %arg10: memref<1x32xf32, #tpu.memory_space<vmem>>, %arg11: memref<1x32xf32, #tpu.memory_space<vmem>>, %arg12: memref<32x128xbf16, #tpu.memory_space<vmem>>, %arg13: memref<1x128xf32, #tpu.memory_space<vmem>>, %arg14: memref<128x32xbf16, #tpu.memory_space<vmem>>, %arg15: memref<1x32xf32, #tpu.memory_space<vmem>>, %arg16: memref<1x8x32xf32, #tpu.memory_space<vmem>>, %arg17: memref<1x4x8x8xbf16, #tpu.memory_space<vmem>>, %arg18: memref<1x4x8x8xbf16, #tpu.memory_space<vmem>>, %arg19: memref<4x8x8xbf16, #tpu.memory_space<vmem>>, %arg20: memref<8x32xbf16, #tpu.memory_space<vmem>>) attributes {dimension_semantics = [#tpu.dimension_semantics<parallel>, #tpu.dimension_semantics<arbitrary>], iteration_bounds = array<i64: 2, 1>, scalar_prefetch = 0 : i64, scratch_operands = 4 : i64, tpu.core_type = #tpu.core_type<tc>, window_params = [{transform_indices = @transform_0, window_bounds = array<i64: 1, 8, 32>}, {transform_indices = @transform_1, window_bounds = array<i64: 1, 8, 32>}, {pipeline_mode = #tpu.pipeline_mode<synchronous>, transform_indices = @transform_2, window_bounds = array<i64: 1, 32>}, {pipeline_mode = #tpu.pipeline_mode<synchronous>, transform_indices = @transform_3, window_bounds = array<i64: 1, 32>}, {pipeline_mode = #tpu.pipeline_mode<synchronous>, transform_indices = @transform_4, window_bounds = array<i64: 32, 96>}, {pipeline_mode = #tpu.pipeline_mode<synchronous>, transform_indices = @transform_5, window_bounds = array<i64: 1, 96>}, {pipeline_mode = #tpu.pipeline_mode<synchronous>, transform_indices = @transform_6, window_bounds = array<i64: 32, 32>}, {pipeline_mode = #tpu.pipeline_mode<synchronous>, transform_indices = @transform_7, window_bounds = array<i64: 1, 32>}, {pipeline_mode = #tpu.pipeline_mode<synchronous>, transform_indices = @transform_8, window_bounds = array<i64: 1, 32>}, {pipeline_mode = #tpu.pipeline_mode<synchronous>, transform_indices = @transform_9, window_bounds = array<i64: 1, 32>}, {pipeline_mode = #tpu.pipeline_mode<synchronous>, transform_indices = @transform_10, window_bounds = array<i64: 32, 128>}, {pipeline_mode = #tpu.pipeline_mode<synchronous>, transform_indices = @transform_11, window_bounds = array<i64: 1, 128>}, {pipeline_mode = #tpu.pipeline_mode<synchronous>, transform_indices = @transform_12, window_bounds = array<i64: 128, 32>}, {pipeline_mode = #tpu.pipeline_mode<synchronous>, transform_indices = @transform_13, window_bounds = array<i64: 1, 32>}, {transform_indices = @transform_14, window_bounds = array<i64: 1, 8, 32>}]} {
    %c0 = arith.constant 0 : index
    %c0_0 = arith.constant 0 : index
    %c0_1 = arith.constant 0 : index
    %0 = vector.load %arg2[%c0, %c0_0, %c0_1] : memref<1x8x32xf32, #tpu.memory_space<vmem>>, vector<1x8x32xf32>
    %1 = vector.shape_cast %0 : vector<1x8x32xf32> to vector<8x32xf32>
    %c0_2 = arith.constant 0 : index
    %c0_3 = arith.constant 0 : index
    %2 = vector.load %arg4[%c0_2, %c0_3] : memref<1x32xf32, #tpu.memory_space<vmem>>, vector<1x32xf32>
    %c0_4 = arith.constant 0 : index
    %c0_5 = arith.constant 0 : index
    %3 = vector.load %arg5[%c0_4, %c0_5] : memref<1x32xf32, #tpu.memory_space<vmem>>, vector<1x32xf32>
    %c0_6 = arith.constant 0 : index
    %c0_7 = arith.constant 0 : index
    %4 = vector.load %arg7[%c0_6, %c0_7] : memref<1x96xf32, #tpu.memory_space<vmem>>, vector<1x96xf32>
    %c0_i32 = arith.constant 0 : i32
    %5 = arith.cmpi eq, %arg1, %c0_i32 : i32
    %6 = arith.extui %5 : i1 to i32
    %c0_i32_8 = arith.constant 0 : i32
    %7 = arith.cmpi ne, %6, %c0_i32_8 : i32
    scf.if %7 {
      %c0_71 = arith.constant 0 : index
      %c0_72 = arith.constant 0 : index
      %c0_73 = arith.constant 0 : index
      %142 = vector.load %arg3[%c0_71, %c0_72, %c0_73] : memref<1x8x32xf32, #tpu.memory_space<vmem>>, vector<1x8x32xf32>
      %143 = vector.shape_cast %142 : vector<1x8x32xf32> to vector<8x32xf32>
      %cst_74 = arith.constant dense<0.000000e+00> : vector<8xf32>
      %144 = vector.multi_reduction <add>, %143, %cst_74 [1] : vector<8x32xf32> to vector<8xf32>
      %145 = vector.shape_cast %144 : vector<8xf32> to vector<8x1xf32>
      %cst_75 = arith.constant 3.200000e+01 : f32
      %146 = vector.broadcast %cst_75 : f32 to vector<8x1xf32>
      %147 = arith.divf %145, %146 : vector<8x1xf32>
      %148 = vector.broadcast %147 : vector<8x1xf32> to vector<8x32xf32>
      %149 = arith.subf %143, %148 : vector<8x32xf32>
      %150 = arith.mulf %149, %149 : vector<8x32xf32>
      %cst_76 = arith.constant dense<0.000000e+00> : vector<8xf32>
      %151 = vector.multi_reduction <add>, %150, %cst_76 [1] : vector<8x32xf32> to vector<8xf32>
      %152 = vector.shape_cast %151 : vector<8xf32> to vector<8x1xf32>
      %cst_77 = arith.constant 3.200000e+01 : f32
      %153 = vector.broadcast %cst_77 : f32 to vector<8x1xf32>
      %154 = arith.divf %152, %153 : vector<8x1xf32>
      %155 = vector.broadcast %147 : vector<8x1xf32> to vector<8x32xf32>
      %156 = arith.subf %143, %155 : vector<8x32xf32>
      %cst_78 = arith.constant 9.99999974E-6 : f32
      %157 = vector.broadcast %cst_78 : f32 to vector<8x1xf32>
      %158 = arith.addf %154, %157 : vector<8x1xf32>
      %159 = math.rsqrt %158 : vector<8x1xf32>
      %160 = vector.broadcast %159 : vector<8x1xf32> to vector<8x32xf32>
      %161 = arith.mulf %156, %160 : vector<8x32xf32>
      %162 = vector.broadcast %2 : vector<1x32xf32> to vector<8x32xf32>
      %163 = arith.mulf %161, %162 : vector<8x32xf32>
      %164 = vector.broadcast %3 : vector<1x32xf32> to vector<8x32xf32>
      %165 = arith.addf %163, %164 : vector<8x32xf32>
      %166 = arith.truncf %165 : vector<8x32xf32> to vector<8x32xbf16>
      %c0_79 = arith.constant 0 : index
      %c32 = arith.constant 32 : index
      %167 = vector.load %arg6[%c0_79, %c32] : memref<32x96xbf16, #tpu.memory_space<vmem>>, vector<32x64xbf16>
      %cst_80 = arith.constant dense<0.000000e+00> : vector<8x64xf32>
      %168 = tpu.matmul %166, %167, %cst_80 {dimension_numbers = #tpu.dot_dimension_numbers<[1], [0], [0], [1], [0, 0, 1, 1], [], []>} : vector<8x32xbf16>, vector<32x64xbf16>, vector<8x64xf32> -> vector<8x64xf32>
      %169 = vector.extract_strided_slice %4 {offsets = [0, 32], sizes = [1, 64], strides = [1, 1]} : vector<1x96xf32> to vector<1x64xf32>
      %170 = vector.broadcast %169 : vector<1x64xf32> to vector<8x64xf32>
      %171 = arith.addf %168, %170 : vector<8x64xf32>
      %172 = arith.truncf %171 : vector<8x64xf32> to vector<8x64xbf16>
      %173 = vector.extract_strided_slice %172 {offsets = [0, 0], sizes = [8, 8], strides = [1, 1]} : vector<8x64xbf16> to vector<8x8xbf16>
      %c0_81 = arith.constant 0 : index
      %c0_82 = arith.constant 0 : index
      %c0_83 = arith.constant 0 : index
      %c0_84 = arith.constant 0 : index
      %174 = vector.load %arg17[%c0_81, %c0_82, %c0_83, %c0_84] : memref<1x4x8x8xbf16, #tpu.memory_space<vmem>>, vector<1x1x8x8xbf16>
      %175 = vector.shape_cast %174 : vector<1x1x8x8xbf16> to vector<8x8xbf16>
      %176 = vector.shape_cast %173 : vector<8x8xbf16> to vector<1x1x8x8xbf16>
      tpu.vector_store %arg17[%c0_81, %c0_82, %c0_83, %c0_84], %176 {strides = array<i32>} : memref<1x4x8x8xbf16, #tpu.memory_space<vmem>>, vector<1x1x8x8xbf16>,
      %177 = vector.extract_strided_slice %172 {offsets = [0, 32], sizes = [8, 8], strides = [1, 1]} : vector<8x64xbf16> to vector<8x8xbf16>
      %c0_85 = arith.constant 0 : index
      %c0_86 = arith.constant 0 : index
      %c0_87 = arith.constant 0 : index
      %c0_88 = arith.constant 0 : index
      %178 = vector.load %arg18[%c0_85, %c0_86, %c0_87, %c0_88] : memref<1x4x8x8xbf16, #tpu.memory_space<vmem>>, vector<1x1x8x8xbf16>
      %179 = vector.shape_cast %178 : vector<1x1x8x8xbf16> to vector<8x8xbf16>
      %180 = vector.shape_cast %177 : vector<8x8xbf16> to vector<1x1x8x8xbf16>
      tpu.vector_store %arg18[%c0_85, %c0_86, %c0_87, %c0_88], %180 {strides = array<i32>} : memref<1x4x8x8xbf16, #tpu.memory_space<vmem>>, vector<1x1x8x8xbf16>,
      %181 = vector.extract_strided_slice %172 {offsets = [0, 8], sizes = [8, 8], strides = [1, 1]} : vector<8x64xbf16> to vector<8x8xbf16>
      %c0_89 = arith.constant 0 : index
      %c1_90 = arith.constant 1 : index
      %c0_91 = arith.constant 0 : index
      %c0_92 = arith.constant 0 : index
      %182 = vector.load %arg17[%c0_89, %c1_90, %c0_91, %c0_92] : memref<1x4x8x8xbf16, #tpu.memory_space<vmem>>, vector<1x1x8x8xbf16>
      %183 = vector.shape_cast %182 : vector<1x1x8x8xbf16> to vector<8x8xbf16>
      %184 = vector.shape_cast %181 : vector<8x8xbf16> to vector<1x1x8x8xbf16>
      tpu.vector_store %arg17[%c0_89, %c1_90, %c0_91, %c0_92], %184 {strides = array<i32>} : memref<1x4x8x8xbf16, #tpu.memory_space<vmem>>, vector<1x1x8x8xbf16>,
      %185 = vector.extract_strided_slice %172 {offsets = [0, 40], sizes = [8, 8], strides = [1, 1]} : vector<8x64xbf16> to vector<8x8xbf16>
      %c0_93 = arith.constant 0 : index
      %c1_94 = arith.constant 1 : index
      %c0_95 = arith.constant 0 : index
      %c0_96 = arith.constant 0 : index
      %186 = vector.load %arg18[%c0_93, %c1_94, %c0_95, %c0_96] : memref<1x4x8x8xbf16, #tpu.memory_space<vmem>>, vector<1x1x8x8xbf16>
      %187 = vector.shape_cast %186 : vector<1x1x8x8xbf16> to vector<8x8xbf16>
      %188 = vector.shape_cast %185 : vector<8x8xbf16> to vector<1x1x8x8xbf16>
      tpu.vector_store %arg18[%c0_93, %c1_94, %c0_95, %c0_96], %188 {strides = array<i32>} : memref<1x4x8x8xbf16, #tpu.memory_space<vmem>>, vector<1x1x8x8xbf16>,
      %189 = vector.extract_strided_slice %172 {offsets = [0, 16], sizes = [8, 8], strides = [1, 1]} : vector<8x64xbf16> to vector<8x8xbf16>
      %c0_97 = arith.constant 0 : index
      %c2_98 = arith.constant 2 : index
      %c0_99 = arith.constant 0 : index
      %c0_100 = arith.constant 0 : index
      %190 = vector.load %arg17[%c0_97, %c2_98, %c0_99, %c0_100] : memref<1x4x8x8xbf16, #tpu.memory_space<vmem>>, vector<1x1x8x8xbf16>
      %191 = vector.shape_cast %190 : vector<1x1x8x8xbf16> to vector<8x8xbf16>
      %192 = vector.shape_cast %189 : vector<8x8xbf16> to vector<1x1x8x8xbf16>
      tpu.vector_store %arg17[%c0_97, %c2_98, %c0_99, %c0_100], %192 {strides = array<i32>} : memref<1x4x8x8xbf16, #tpu.memory_space<vmem>>, vector<1x1x8x8xbf16>,
      %193 = vector.extract_strided_slice %172 {offsets = [0, 48], sizes = [8, 8], strides = [1, 1]} : vector<8x64xbf16> to vector<8x8xbf16>
      %c0_101 = arith.constant 0 : index
      %c2_102 = arith.constant 2 : index
      %c0_103 = arith.constant 0 : index
      %c0_104 = arith.constant 0 : index
      %194 = vector.load %arg18[%c0_101, %c2_102, %c0_103, %c0_104] : memref<1x4x8x8xbf16, #tpu.memory_space<vmem>>, vector<1x1x8x8xbf16>
      %195 = vector.shape_cast %194 : vector<1x1x8x8xbf16> to vector<8x8xbf16>
      %196 = vector.shape_cast %193 : vector<8x8xbf16> to vector<1x1x8x8xbf16>
      tpu.vector_store %arg18[%c0_101, %c2_102, %c0_103, %c0_104], %196 {strides = array<i32>} : memref<1x4x8x8xbf16, #tpu.memory_space<vmem>>, vector<1x1x8x8xbf16>,
      %197 = vector.extract_strided_slice %172 {offsets = [0, 24], sizes = [8, 8], strides = [1, 1]} : vector<8x64xbf16> to vector<8x8xbf16>
      %c0_105 = arith.constant 0 : index
      %c3_106 = arith.constant 3 : index
      %c0_107 = arith.constant 0 : index
      %c0_108 = arith.constant 0 : index
      %198 = vector.load %arg17[%c0_105, %c3_106, %c0_107, %c0_108] : memref<1x4x8x8xbf16, #tpu.memory_space<vmem>>, vector<1x1x8x8xbf16>
      %199 = vector.shape_cast %198 : vector<1x1x8x8xbf16> to vector<8x8xbf16>
      %200 = vector.shape_cast %197 : vector<8x8xbf16> to vector<1x1x8x8xbf16>
      tpu.vector_store %arg17[%c0_105, %c3_106, %c0_107, %c0_108], %200 {strides = array<i32>} : memref<1x4x8x8xbf16, #tpu.memory_space<vmem>>, vector<1x1x8x8xbf16>,
      %201 = vector.extract_strided_slice %172 {offsets = [0, 56], sizes = [8, 8], strides = [1, 1]} : vector<8x64xbf16> to vector<8x8xbf16>
      %c0_109 = arith.constant 0 : index
      %c3_110 = arith.constant 3 : index
      %c0_111 = arith.constant 0 : index
      %c0_112 = arith.constant 0 : index
      %202 = vector.load %arg18[%c0_109, %c3_110, %c0_111, %c0_112] : memref<1x4x8x8xbf16, #tpu.memory_space<vmem>>, vector<1x1x8x8xbf16>
      %203 = vector.shape_cast %202 : vector<1x1x8x8xbf16> to vector<8x8xbf16>
      %204 = vector.shape_cast %201 : vector<8x8xbf16> to vector<1x1x8x8xbf16>
      tpu.vector_store %arg18[%c0_109, %c3_110, %c0_111, %c0_112], %204 {strides = array<i32>} : memref<1x4x8x8xbf16, #tpu.memory_space<vmem>>, vector<1x1x8x8xbf16>,
    } else {
    }
    %cst = arith.constant dense<0.000000e+00> : vector<8xf32>
    %8 = vector.multi_reduction <add>, %1, %cst [1] : vector<8x32xf32> to vector<8xf32>
    %9 = vector.shape_cast %8 : vector<8xf32> to vector<8x1xf32>
    %cst_9 = arith.constant 3.200000e+01 : f32
    %10 = vector.broadcast %cst_9 : f32 to vector<8x1xf32>
    %11 = arith.divf %9, %10 : vector<8x1xf32>
    %12 = vector.broadcast %11 : vector<8x1xf32> to vector<8x32xf32>
    %13 = arith.subf %1, %12 : vector<8x32xf32>
    %14 = arith.mulf %13, %13 : vector<8x32xf32>
    %cst_10 = arith.constant dense<0.000000e+00> : vector<8xf32>
    %15 = vector.multi_reduction <add>, %14, %cst_10 [1] : vector<8x32xf32> to vector<8xf32>
    %16 = vector.shape_cast %15 : vector<8xf32> to vector<8x1xf32>
    %cst_11 = arith.constant 3.200000e+01 : f32
    %17 = vector.broadcast %cst_11 : f32 to vector<8x1xf32>
    %18 = arith.divf %16, %17 : vector<8x1xf32>
    %19 = vector.broadcast %11 : vector<8x1xf32> to vector<8x32xf32>
    %20 = arith.subf %1, %19 : vector<8x32xf32>
    %cst_12 = arith.constant 9.99999974E-6 : f32
    %21 = vector.broadcast %cst_12 : f32 to vector<8x1xf32>
    %22 = arith.addf %18, %21 : vector<8x1xf32>
    %23 = math.rsqrt %22 : vector<8x1xf32>
    %24 = vector.broadcast %23 : vector<8x1xf32> to vector<8x32xf32>
    %25 = arith.mulf %20, %24 : vector<8x32xf32>
    %26 = vector.broadcast %2 : vector<1x32xf32> to vector<8x32xf32>
    %27 = arith.mulf %25, %26 : vector<8x32xf32>
    %28 = vector.broadcast %3 : vector<1x32xf32> to vector<8x32xf32>
    %29 = arith.addf %27, %28 : vector<8x32xf32>
    %30 = arith.truncf %29 : vector<8x32xf32> to vector<8x32xbf16>
    %c0_13 = arith.constant 0 : index
    %c0_14 = arith.constant 0 : index
    %31 = vector.load %arg6[%c0_13, %c0_14] : memref<32x96xbf16, #tpu.memory_space<vmem>>, vector<32x32xbf16>
    %cst_15 = arith.constant dense<0.000000e+00> : vector<8x32xf32>
    %32 = tpu.matmul %30, %31, %cst_15 {dimension_numbers = #tpu.dot_dimension_numbers<[1], [0], [0], [1], [0, 0, 1, 1], [], []>} : vector<8x32xbf16>, vector<32x32xbf16>, vector<8x32xf32> -> vector<8x32xf32>
    %33 = vector.extract_strided_slice %4 {offsets = [0, 0], sizes = [1, 32], strides = [1, 1]} : vector<1x96xf32> to vector<1x32xf32>
    %34 = vector.broadcast %33 : vector<1x32xf32> to vector<8x32xf32>
    %35 = arith.addf %32, %34 : vector<8x32xf32>
    %36 = arith.truncf %35 : vector<8x32xf32> to vector<8x32xbf16>
    %37 = vector.extract_strided_slice %36 {offsets = [0, 0], sizes = [8, 8], strides = [1, 1]} : vector<8x32xbf16> to vector<8x8xbf16>
    %c0_16 = arith.constant 0 : index
    %c0_17 = arith.constant 0 : index
    %c0_18 = arith.constant 0 : index
    %38 = vector.load %arg19[%c0_16, %c0_17, %c0_18] : memref<4x8x8xbf16, #tpu.memory_space<vmem>>, vector<1x8x8xbf16>
    %39 = vector.shape_cast %38 : vector<1x8x8xbf16> to vector<8x8xbf16>
    %40 = vector.shape_cast %37 : vector<8x8xbf16> to vector<1x8x8xbf16>
    tpu.vector_store %arg19[%c0_16, %c0_17, %c0_18], %40 {strides = array<i32>} : memref<4x8x8xbf16, #tpu.memory_space<vmem>>, vector<1x8x8xbf16>,
    %41 = vector.extract_strided_slice %36 {offsets = [0, 8], sizes = [8, 8], strides = [1, 1]} : vector<8x32xbf16> to vector<8x8xbf16>
    %c1 = arith.constant 1 : index
    %c0_19 = arith.constant 0 : index
    %c0_20 = arith.constant 0 : index
    %42 = vector.load %arg19[%c1, %c0_19, %c0_20] : memref<4x8x8xbf16, #tpu.memory_space<vmem>>, vector<1x8x8xbf16>
    %43 = vector.shape_cast %42 : vector<1x8x8xbf16> to vector<8x8xbf16>
    %44 = vector.shape_cast %41 : vector<8x8xbf16> to vector<1x8x8xbf16>
    tpu.vector_store %arg19[%c1, %c0_19, %c0_20], %44 {strides = array<i32>} : memref<4x8x8xbf16, #tpu.memory_space<vmem>>, vector<1x8x8xbf16>,
    %45 = vector.extract_strided_slice %36 {offsets = [0, 16], sizes = [8, 8], strides = [1, 1]} : vector<8x32xbf16> to vector<8x8xbf16>
    %c2 = arith.constant 2 : index
    %c0_21 = arith.constant 0 : index
    %c0_22 = arith.constant 0 : index
    %46 = vector.load %arg19[%c2, %c0_21, %c0_22] : memref<4x8x8xbf16, #tpu.memory_space<vmem>>, vector<1x8x8xbf16>
    %47 = vector.shape_cast %46 : vector<1x8x8xbf16> to vector<8x8xbf16>
    %48 = vector.shape_cast %45 : vector<8x8xbf16> to vector<1x8x8xbf16>
    tpu.vector_store %arg19[%c2, %c0_21, %c0_22], %48 {strides = array<i32>} : memref<4x8x8xbf16, #tpu.memory_space<vmem>>, vector<1x8x8xbf16>,
    %49 = vector.extract_strided_slice %36 {offsets = [0, 24], sizes = [8, 8], strides = [1, 1]} : vector<8x32xbf16> to vector<8x8xbf16>
    %c3 = arith.constant 3 : index
    %c0_23 = arith.constant 0 : index
    %c0_24 = arith.constant 0 : index
    %50 = vector.load %arg19[%c3, %c0_23, %c0_24] : memref<4x8x8xbf16, #tpu.memory_space<vmem>>, vector<1x8x8xbf16>
    %51 = vector.shape_cast %50 : vector<1x8x8xbf16> to vector<8x8xbf16>
    %52 = vector.shape_cast %49 : vector<8x8xbf16> to vector<1x8x8xbf16>
    tpu.vector_store %arg19[%c3, %c0_23, %c0_24], %52 {strides = array<i32>} : memref<4x8x8xbf16, #tpu.memory_space<vmem>>, vector<1x8x8xbf16>,
    %c0_25 = arith.constant 0 : index
    %c0_26 = arith.constant 0 : index
    %c0_27 = arith.constant 0 : index
    %53 = vector.load %arg19[%c0_25, %c0_26, %c0_27] : memref<4x8x8xbf16, #tpu.memory_space<vmem>>, vector<4x8x8xbf16>
    %54 = tpu.iota {dimensions = array<i32: 0>} : vector<8x8xi32>
    %c8_i32 = arith.constant 8 : i32
    %55 = arith.muli %arg1, %c8_i32 : i32
    %56 = vector.broadcast %55 : i32 to vector<8x8xi32>
    %57 = arith.addi %54, %56 : vector<8x8xi32>
    %58 = tpu.iota {dimensions = array<i32: 1>} : vector<8x8xi32>
    %cst_28 = arith.constant -1.000000e+30 : f32
    %59 = vector.broadcast %cst_28 : f32 to vector<4x8x1xf32>
    %cst_29 = arith.constant 0.000000e+00 : f32
    %60 = vector.broadcast %cst_29 : f32 to vector<4x8x1xf32>
    %cst_30 = arith.constant 0.000000e+00 : f32
    %61 = vector.broadcast %cst_30 : f32 to vector<4x8x8xf32>
    %c1_i32 = arith.constant 1 : i32
    %62 = arith.addi %arg1, %c1_i32 : i32
    %c0_i32_31 = arith.constant 0 : i32
    %63 = arith.subi %62, %c0_i32_31 : i32
    %64 = arith.addi %c0_i32_31, %63 : i32
    %c1_i32_32 = arith.constant 1 : i32
    %65:3 = scf.for %arg21 = %c0_i32_31 to %64 step %c1_i32_32 iter_args(%arg22 = %59, %arg23 = %60, %arg24 = %61) -> (vector<4x8x1xf32>, vector<4x8x1xf32>, vector<4x8x8xf32>)  : i32 {
      %142 = arith.index_cast %arg21 : i32 to index
      %c0_71 = arith.constant 0 : index
      %c0_72 = arith.constant 0 : index
      %c0_73 = arith.constant 0 : index
      %143 = vector.load %arg17[%142, %c0_71, %c0_72, %c0_73] : memref<1x4x8x8xbf16, #tpu.memory_space<vmem>>, vector<1x4x8x8xbf16>
      %144 = vector.shape_cast %143 : vector<1x4x8x8xbf16> to vector<4x8x8xbf16>
      %145 = arith.index_cast %arg21 : i32 to index
      %c0_74 = arith.constant 0 : index
      %c0_75 = arith.constant 0 : index
      %c0_76 = arith.constant 0 : index
      %146 = vector.load %arg18[%145, %c0_74, %c0_75, %c0_76] : memref<1x4x8x8xbf16, #tpu.memory_space<vmem>>, vector<1x4x8x8xbf16>
      %147 = vector.shape_cast %146 : vector<1x4x8x8xbf16> to vector<4x8x8xbf16>
      "tpu.trace_start"() <{level = 10 : i32, message = "hqd,hkd->hqk"}> : () -> ()
      %cst_77 = arith.constant dense<0.000000e+00> : vector<4x8x8xf32>
      %148 = tpu.matmul %53, %144, %cst_77 {dimension_numbers = #tpu.dot_dimension_numbers<[2], [2], [1], [1], [0, 0, 0, 1, 1, 1], [0], [0]>} : vector<4x8x8xbf16>, vector<4x8x8xbf16>, vector<4x8x8xf32> -> vector<4x8x8xf32>
      "tpu.trace_stop"() : () -> ()
      %cst_78 = arith.constant 0.353553385 : f32
      %149 = vector.broadcast %cst_78 : f32 to vector<4x8x8xf32>
      %150 = arith.mulf %148, %149 : vector<4x8x8xf32>
      %c8_i32_79 = arith.constant 8 : i32
      %151 = arith.muli %arg21, %c8_i32_79 : i32
      %152 = vector.broadcast %151 : i32 to vector<8x8xi32>
      %153 = arith.addi %58, %152 : vector<8x8xi32>
      %154 = arith.cmpi sle, %153, %57 : vector<8x8xi32>
      %cst_80 = arith.constant 0.000000e+00 : f32
      %cst_81 = arith.constant -1.000000e+30 : f32
      %155 = vector.broadcast %cst_80 : f32 to vector<8x8xf32>
      %156 = vector.broadcast %cst_81 : f32 to vector<8x8xf32>
      %157 = arith.select %154, %155, %156 : vector<8x8xi1>, vector<8x8xf32>
      %158 = vector.shape_cast %157 : vector<8x8xf32> to vector<1x8x8xf32>
      %159 = vector.broadcast %158 : vector<1x8x8xf32> to vector<4x8x8xf32>
      %160 = arith.addf %150, %159 : vector<4x8x8xf32>
      %cst_82 = arith.constant dense<0xFF800000> : vector<4x8xf32>
      %161 = vector.multi_reduction <maximumf>, %160, %cst_82 [2] : vector<4x8x8xf32> to vector<4x8xf32>
      %162 = vector.shape_cast %161 : vector<4x8xf32> to vector<4x8x1xf32>
      %163 = arith.maximumf %arg22, %162 : vector<4x8x1xf32>
      %164 = arith.subf %arg22, %163 : vector<4x8x1xf32>
      %165 = math.exp %164 : vector<4x8x1xf32>
      %166 = vector.broadcast %163 : vector<4x8x1xf32> to vector<4x8x8xf32>
      %167 = arith.subf %160, %166 : vector<4x8x8xf32>
      %168 = math.exp %167 : vector<4x8x8xf32>
      %169 = arith.mulf %165, %arg23 : vector<4x8x1xf32>
      %cst_83 = arith.constant dense<0.000000e+00> : vector<4x8xf32>
      %170 = vector.multi_reduction <add>, %168, %cst_83 [2] : vector<4x8x8xf32> to vector<4x8xf32>
      %171 = vector.shape_cast %170 : vector<4x8xf32> to vector<4x8x1xf32>
      %172 = arith.addf %169, %171 : vector<4x8x1xf32>
      %173 = vector.broadcast %165 : vector<4x8x1xf32> to vector<4x8x8xf32>
      %174 = arith.mulf %173, %arg24 : vector<4x8x8xf32>
      %175 = arith.truncf %168 : vector<4x8x8xf32> to vector<4x8x8xbf16>
      "tpu.trace_start"() <{level = 10 : i32, message = "hqk,hkd->hqd"}> : () -> ()
      %cst_84 = arith.constant dense<0.000000e+00> : vector<4x8x8xf32>
      %176 = tpu.matmul %175, %147, %cst_84 {dimension_numbers = #tpu.dot_dimension_numbers<[2], [1], [1], [2], [0, 0, 0, 1, 1, 2], [0], [0]>} : vector<4x8x8xbf16>, vector<4x8x8xbf16>, vector<4x8x8xf32> -> vector<4x8x8xf32>
      "tpu.trace_stop"() : () -> ()
      %177 = arith.addf %174, %176 : vector<4x8x8xf32>
      scf.yield %163, %172, %177 : vector<4x8x1xf32>, vector<4x8x1xf32>, vector<4x8x8xf32>
    }
    %66 = tpu.reciprocal %65#1 {approx = true} : vector<4x8x1xf32> -> vector<4x8x1xf32>
    %67 = vector.broadcast %66 : vector<4x8x1xf32> to vector<4x8x8xf32>
    %68 = arith.mulf %65#2, %67 : vector<4x8x8xf32>
    %69 = arith.truncf %68 : vector<4x8x8xf32> to vector<4x8x8xbf16>
    %70 = vector.extract_strided_slice %69 {offsets = [0, 0, 0], sizes = [1, 8, 8], strides = [1, 1, 1]} : vector<4x8x8xbf16> to vector<1x8x8xbf16>
    %71 = vector.shape_cast %70 : vector<1x8x8xbf16> to vector<8x8xbf16>
    %c0_33 = arith.constant 0 : index
    %c0_34 = arith.constant 0 : index
    %72 = vector.load %arg20[%c0_33, %c0_34] : memref<8x32xbf16, #tpu.memory_space<vmem>>, vector<8x8xbf16>
    tpu.vector_store %arg20[%c0_33, %c0_34], %71 {strides = array<i32>} : memref<8x32xbf16, #tpu.memory_space<vmem>>, vector<8x8xbf16>,
    %73 = vector.extract_strided_slice %69 {offsets = [1, 0, 0], sizes = [1, 8, 8], strides = [1, 1, 1]} : vector<4x8x8xbf16> to vector<1x8x8xbf16>
    %74 = vector.shape_cast %73 : vector<1x8x8xbf16> to vector<8x8xbf16>
    %c0_35 = arith.constant 0 : index
    %c8 = arith.constant 8 : index
    %75 = vector.load %arg20[%c0_35, %c8] : memref<8x32xbf16, #tpu.memory_space<vmem>>, vector<8x8xbf16>
    tpu.vector_store %arg20[%c0_35, %c8], %74 {strides = array<i32>} : memref<8x32xbf16, #tpu.memory_space<vmem>>, vector<8x8xbf16>,
    %76 = vector.extract_strided_slice %69 {offsets = [2, 0, 0], sizes = [1, 8, 8], strides = [1, 1, 1]} : vector<4x8x8xbf16> to vector<1x8x8xbf16>
    %77 = vector.shape_cast %76 : vector<1x8x8xbf16> to vector<8x8xbf16>
    %c0_36 = arith.constant 0 : index
    %c16 = arith.constant 16 : index
    %78 = vector.load %arg20[%c0_36, %c16] : memref<8x32xbf16, #tpu.memory_space<vmem>>, vector<8x8xbf16>
    tpu.vector_store %arg20[%c0_36, %c16], %77 {strides = array<i32>} : memref<8x32xbf16, #tpu.memory_space<vmem>>, vector<8x8xbf16>,
    %79 = vector.extract_strided_slice %69 {offsets = [3, 0, 0], sizes = [1, 8, 8], strides = [1, 1, 1]} : vector<4x8x8xbf16> to vector<1x8x8xbf16>
    %80 = vector.shape_cast %79 : vector<1x8x8xbf16> to vector<8x8xbf16>
    %c0_37 = arith.constant 0 : index
    %c24 = arith.constant 24 : index
    %81 = vector.load %arg20[%c0_37, %c24] : memref<8x32xbf16, #tpu.memory_space<vmem>>, vector<8x8xbf16>
    tpu.vector_store %arg20[%c0_37, %c24], %80 {strides = array<i32>} : memref<8x32xbf16, #tpu.memory_space<vmem>>, vector<8x8xbf16>,
    %c0_38 = arith.constant 0 : index
    %c0_39 = arith.constant 0 : index
    %82 = vector.load %arg20[%c0_38, %c0_39] : memref<8x32xbf16, #tpu.memory_space<vmem>>, vector<8x32xbf16>
    %c0_40 = arith.constant 0 : index
    %c0_41 = arith.constant 0 : index
    %83 = vector.load %arg8[%c0_40, %c0_41] : memref<32x32xbf16, #tpu.memory_space<vmem>>, vector<32x32xbf16>
    %cst_42 = arith.constant dense<0.000000e+00> : vector<8x32xf32>
    %84 = tpu.matmul %82, %83, %cst_42 {dimension_numbers = #tpu.dot_dimension_numbers<[1], [0], [0], [1], [0, 0, 1, 1], [], []>} : vector<8x32xbf16>, vector<32x32xbf16>, vector<8x32xf32> -> vector<8x32xf32>
    %c0_43 = arith.constant 0 : index
    %c0_44 = arith.constant 0 : index
    %85 = vector.load %arg9[%c0_43, %c0_44] : memref<1x32xf32, #tpu.memory_space<vmem>>, vector<1x32xf32>
    %86 = vector.broadcast %85 : vector<1x32xf32> to vector<8x32xf32>
    %87 = arith.addf %84, %86 : vector<8x32xf32>
    %88 = arith.addf %1, %87 : vector<8x32xf32>
    %c0_45 = arith.constant 0 : index
    %c0_46 = arith.constant 0 : index
    %89 = vector.load %arg10[%c0_45, %c0_46] : memref<1x32xf32, #tpu.memory_space<vmem>>, vector<1x32xf32>
    %c0_47 = arith.constant 0 : index
    %c0_48 = arith.constant 0 : index
    %90 = vector.load %arg11[%c0_47, %c0_48] : memref<1x32xf32, #tpu.memory_space<vmem>>, vector<1x32xf32>
    %cst_49 = arith.constant dense<0.000000e+00> : vector<8xf32>
    %91 = vector.multi_reduction <add>, %88, %cst_49 [1] : vector<8x32xf32> to vector<8xf32>
    %92 = vector.shape_cast %91 : vector<8xf32> to vector<8x1xf32>
    %cst_50 = arith.constant 3.200000e+01 : f32
    %93 = vector.broadcast %cst_50 : f32 to vector<8x1xf32>
    %94 = arith.divf %92, %93 : vector<8x1xf32>
    %95 = vector.broadcast %94 : vector<8x1xf32> to vector<8x32xf32>
    %96 = arith.subf %88, %95 : vector<8x32xf32>
    %97 = arith.mulf %96, %96 : vector<8x32xf32>
    %cst_51 = arith.constant dense<0.000000e+00> : vector<8xf32>
    %98 = vector.multi_reduction <add>, %97, %cst_51 [1] : vector<8x32xf32> to vector<8xf32>
    %99 = vector.shape_cast %98 : vector<8xf32> to vector<8x1xf32>
    %cst_52 = arith.constant 3.200000e+01 : f32
    %100 = vector.broadcast %cst_52 : f32 to vector<8x1xf32>
    %101 = arith.divf %99, %100 : vector<8x1xf32>
    %102 = vector.broadcast %94 : vector<8x1xf32> to vector<8x32xf32>
    %103 = arith.subf %88, %102 : vector<8x32xf32>
    %cst_53 = arith.constant 9.99999974E-6 : f32
    %104 = vector.broadcast %cst_53 : f32 to vector<8x1xf32>
    %105 = arith.addf %101, %104 : vector<8x1xf32>
    %106 = math.rsqrt %105 : vector<8x1xf32>
    %107 = vector.broadcast %106 : vector<8x1xf32> to vector<8x32xf32>
    %108 = arith.mulf %103, %107 : vector<8x32xf32>
    %109 = vector.broadcast %89 : vector<1x32xf32> to vector<8x32xf32>
    %110 = arith.mulf %108, %109 : vector<8x32xf32>
    %111 = vector.broadcast %90 : vector<1x32xf32> to vector<8x32xf32>
    %112 = arith.addf %110, %111 : vector<8x32xf32>
    %113 = arith.truncf %112 : vector<8x32xf32> to vector<8x32xbf16>
    %c0_54 = arith.constant 0 : index
    %c0_55 = arith.constant 0 : index
    %114 = vector.load %arg12[%c0_54, %c0_55] : memref<32x128xbf16, #tpu.memory_space<vmem>>, vector<32x128xbf16>
    %cst_56 = arith.constant dense<0.000000e+00> : vector<8x128xf32>
    %115 = tpu.matmul %113, %114, %cst_56 {dimension_numbers = #tpu.dot_dimension_numbers<[1], [0], [0], [1], [0, 0, 1, 1], [], []>} : vector<8x32xbf16>, vector<32x128xbf16>, vector<8x128xf32> -> vector<8x128xf32>
    %c0_57 = arith.constant 0 : index
    %c0_58 = arith.constant 0 : index
    %116 = vector.load %arg13[%c0_57, %c0_58] : memref<1x128xf32, #tpu.memory_space<vmem>>, vector<1x128xf32>
    %117 = vector.broadcast %116 : vector<1x128xf32> to vector<8x128xf32>
    %118 = arith.addf %115, %117 : vector<8x128xf32>
    %119 = arith.mulf %118, %118 : vector<8x128xf32>
    %120 = arith.mulf %118, %119 : vector<8x128xf32>
    %cst_59 = arith.constant 4.471500e-02 : f32
    %121 = vector.broadcast %cst_59 : f32 to vector<8x128xf32>
    %122 = arith.mulf %121, %120 : vector<8x128xf32>
    %123 = arith.addf %118, %122 : vector<8x128xf32>
    %cst_60 = arith.constant 0.797884583 : f32
    %124 = vector.broadcast %cst_60 : f32 to vector<8x128xf32>
    %125 = arith.mulf %124, %123 : vector<8x128xf32>
    %126 = math.tanh %125 : vector<8x128xf32>
    %cst_61 = arith.constant 1.000000e+00 : f32
    %127 = vector.broadcast %cst_61 : f32 to vector<8x128xf32>
    %128 = arith.addf %127, %126 : vector<8x128xf32>
    %cst_62 = arith.constant 5.000000e-01 : f32
    %129 = vector.broadcast %cst_62 : f32 to vector<8x128xf32>
    %130 = arith.mulf %129, %128 : vector<8x128xf32>
    %131 = arith.mulf %118, %130 : vector<8x128xf32>
    %132 = arith.truncf %131 : vector<8x128xf32> to vector<8x128xbf16>
    %c0_63 = arith.constant 0 : index
    %c0_64 = arith.constant 0 : index
    %133 = vector.load %arg14[%c0_63, %c0_64] : memref<128x32xbf16, #tpu.memory_space<vmem>>, vector<128x32xbf16>
    %cst_65 = arith.constant dense<0.000000e+00> : vector<8x32xf32>
    %134 = tpu.matmul %132, %133, %cst_65 {dimension_numbers = #tpu.dot_dimension_numbers<[1], [0], [0], [1], [0, 0, 1, 1], [], []>} : vector<8x128xbf16>, vector<128x32xbf16>, vector<8x32xf32> -> vector<8x32xf32>
    %c0_66 = arith.constant 0 : index
    %c0_67 = arith.constant 0 : index
    %135 = vector.load %arg15[%c0_66, %c0_67] : memref<1x32xf32, #tpu.memory_space<vmem>>, vector<1x32xf32>
    %136 = vector.broadcast %135 : vector<1x32xf32> to vector<8x32xf32>
    %137 = arith.addf %134, %136 : vector<8x32xf32>
    %138 = arith.addf %88, %137 : vector<8x32xf32>
    %c0_68 = arith.constant 0 : index
    %c0_69 = arith.constant 0 : index
    %c0_70 = arith.constant 0 : index
    %139 = vector.load %arg16[%c0_68, %c0_69, %c0_70] : memref<1x8x32xf32, #tpu.memory_space<vmem>>, vector<1x8x32xf32>
    %140 = vector.shape_cast %139 : vector<1x8x32xf32> to vector<8x32xf32>
    %141 = vector.shape_cast %138 : vector<8x32xf32> to vector<1x8x32xf32>
    tpu.vector_store %arg16[%c0_68, %c0_69, %c0_70], %141 {strides = array<i32>} : memref<1x8x32xf32, #tpu.memory_space<vmem>>, vector<1x8x32xf32>,
    return
  }
  func.func @transform_0(%arg0: i32, %arg1: i32) -> (i32, i32, i32) {
    %c0_i32 = arith.constant 0 : i32
    %c0_i32_0 = arith.constant 0 : i32
    return %arg0, %arg1, %c0_i32 : i32, i32, i32
  }
  func.func @transform_1(%arg0: i32, %arg1: i32) -> (i32, i32, i32) {
    %c0_i32 = arith.constant 0 : i32
    %c0_i32_0 = arith.constant 0 : i32
    %c0_i32_1 = arith.constant 0 : i32
    return %arg0, %c0_i32, %c0_i32_0 : i32, i32, i32
  }
  func.func @transform_2(%arg0: i32, %arg1: i32) -> (i32, i32) {
    %c0_i32 = arith.constant 0 : i32
    %c0_i32_0 = arith.constant 0 : i32
    %c0_i32_1 = arith.constant 0 : i32
    return %c0_i32, %c0_i32_0 : i32, i32
  }
  func.func @transform_3(%arg0: i32, %arg1: i32) -> (i32, i32) {
    %c0_i32 = arith.constant 0 : i32
    %c0_i32_0 = arith.constant 0 : i32
    %c0_i32_1 = arith.constant 0 : i32
    return %c0_i32, %c0_i32_0 : i32, i32
  }
  func.func @transform_4(%arg0: i32, %arg1: i32) -> (i32, i32) {
    %c0_i32 = arith.constant 0 : i32
    %c0_i32_0 = arith.constant 0 : i32
    %c0_i32_1 = arith.constant 0 : i32
    return %c0_i32, %c0_i32_0 : i32, i32
  }
  func.func @transform_5(%arg0: i32, %arg1: i32) -> (i32, i32) {
    %c0_i32 = arith.constant 0 : i32
    %c0_i32_0 = arith.constant 0 : i32
    %c0_i32_1 = arith.constant 0 : i32
    return %c0_i32, %c0_i32_0 : i32, i32
  }
  func.func @transform_6(%arg0: i32, %arg1: i32) -> (i32, i32) {
    %c0_i32 = arith.constant 0 : i32
    %c0_i32_0 = arith.constant 0 : i32
    %c0_i32_1 = arith.constant 0 : i32
    return %c0_i32, %c0_i32_0 : i32, i32
  }
  func.func @transform_7(%arg0: i32, %arg1: i32) -> (i32, i32) {
    %c0_i32 = arith.constant 0 : i32
    %c0_i32_0 = arith.constant 0 : i32
    %c0_i32_1 = arith.constant 0 : i32
    return %c0_i32, %c0_i32_0 : i32, i32
  }
  func.func @transform_8(%arg0: i32, %arg1: i32) -> (i32, i32) {
    %c0_i32 = arith.constant 0 : i32
    %c0_i32_0 = arith.constant 0 : i32
    %c0_i32_1 = arith.constant 0 : i32
    return %c0_i32, %c0_i32_0 : i32, i32
  }
  func.func @transform_9(%arg0: i32, %arg1: i32) -> (i32, i32) {
    %c0_i32 = arith.constant 0 : i32
    %c0_i32_0 = arith.constant 0 : i32
    %c0_i32_1 = arith.constant 0 : i32
    return %c0_i32, %c0_i32_0 : i32, i32
  }
  func.func @transform_10(%arg0: i32, %arg1: i32) -> (i32, i32) {
    %c0_i32 = arith.constant 0 : i32
    %c0_i32_0 = arith.constant 0 : i32
    %c0_i32_1 = arith.constant 0 : i32
    return %c0_i32, %c0_i32_0 : i32, i32
  }
  func.func @transform_11(%arg0: i32, %arg1: i32) -> (i32, i32) {
    %c0_i32 = arith.constant 0 : i32
    %c0_i32_0 = arith.constant 0 : i32
    %c0_i32_1 = arith.constant 0 : i32
    return %c0_i32, %c0_i32_0 : i32, i32
  }
  func.func @transform_12(%arg0: i32, %arg1: i32) -> (i32, i32) {
    %c0_i32 = arith.constant 0 : i32
    %c0_i32_0 = arith.constant 0 : i32
    %c0_i32_1 = arith.constant 0 : i32
    return %c0_i32, %c0_i32_0 : i32, i32
  }
  func.func @transform_13(%arg0: i32, %arg1: i32) -> (i32, i32) {
    %c0_i32 = arith.constant 0 : i32
    %c0_i32_0 = arith.constant 0 : i32
    %c0_i32_1 = arith.constant 0 : i32
    return %c0_i32, %c0_i32_0 : i32, i32
  }
  func.func @transform_14(%arg0: i32, %arg1: i32) -> (i32, i32, i32) {
    %c0_i32 = arith.constant 0 : i32
    %c0_i32_0 = arith.constant 0 : i32
    return %arg0, %arg1, %c0_i32 : i32, i32, i32
  }
}

</mosaic_0001>

<bundles_post_ra>
// kernel: tpu_custom_call.1
= control target key start
LH: loop header
LB: loop body
LE: loop exit
PB: predicated region body
PF: predicated region fallthrough
CT: control target
= control target key end

     0   :  { %19 = vsyncpa [#allocation7], 0  ;;  %s3069_s0 = inlined_call_operand.vmem [shape: f32[2,8,32], index: 0, kind: input, shape index: {}]   ;;  %s3070_s1 = inlined_call_operand.vmem [shape: f32[2,8,32], index: 1, kind: input, shape index: {}]   ;;  %s3071_s2 = inlined_call_operand.vmem [shape: f32[1,32], index: 2, kind: input, shape index: {}]   ;;  %s3072_s3 = inlined_call_operand.vmem [shape: f32[1,32], index: 3, kind: input, shape index: {}]   ;;  %s3073_s4 = inlined_call_operand.vmem [shape: bf16[32,96], index: 4, kind: input, shape index: {}]   ;;  %s3074_s5 = inlined_call_operand.vmem [shape: f32[1,96], index: 5, kind: input, shape index: {}]   ;;  %s3075_s6 = inlined_call_operand.vmem [shape: bf16[32,32], index: 6, kind: input, shape index: {}]   ;;  %s3076_s7 = inlined_call_operand.vmem [shape: f32[1,32], index: 7, kind: input, shape index: {}]   ;;  %s3077_s8 = inlined_call_operand.vmem [shape: f32[1,32], index: 8, kind: input, shape index: {}]   ;;  %s3078_s9 = inlined_call_operand.hbm [shape: f32[1,32], index: 9, kind: input, shape index: {}]   ;;  %s3079_s10 = inlined_call_operand.vmem [shape: bf16[32,128], index: 10, kind: input, shape index: {}]   ;;  %s3080_s11 = inlined_call_operand.hbm [shape: f32[1,128], index: 11, kind: input, shape index: {}]   ;;  %s3081_s12 = inlined_call_operand.vmem [shape: bf16[128,32], index: 12, kind: input, shape index: {}]   ;;  %s3082_s13 = inlined_call_operand.vmem [shape: f32[1,32], index: 13, kind: input, shape index: {}]   ;;  %s3083_s14 = inlined_call_operand.hbm [shape: f32[2,8,32], index: 14, kind: output, shape index: {}]  }
   0x1   :  { %20 = vsyncpa [#allocation10], 0 }
   0x2   :  { %21 = vsyncpa [#allocation8], 0 }
   0x3   :  { %23 = vsyncpa [#allocation8 + $0x1], 0  ;;  %s2568_s29 = smov 0   ;;  %s2570_s30 = smov 0  }
   0x4   :  { %s2572_s15 = smov 0   ;;  %s2574_s16 = smov 0  }
   0x5   :  { %s2576_s17 = smov 0   ;;  %s2578_s18 = smov 0  }
   0x6 LB: > { %3091 = sst [smem:[#allocation15_spill]] %s2409_s15  ;;  %s1785_s19 = sadd.s32 4294967295, %s2421_s18   ;;  %s2421_s18 = sphi %s2578_s18, %s29_s18   ;;  %s2417_s17 = sphi %s2576_s17, %s3121_s17   ;;  %s2413_s16 = sphi %s2574_s16, %s3120_s16   ;;  %s2409_s15 = sphi %s2572_s15, %s3119_s15   ;;  %s2405_s30 = sphi %s2570_s30, %s3123_s30   ;;  %s2401_s29 = sphi %s2568_s29, %s3122_s29  }
   0x7   : > { %3092 = sst [smem:[#allocation16_spill]] %s2417_s17  ;;  %s1786_s20 = sadd.s32 4294967294, %s2421_s18  }
   0x8   : > { %s41_s21 = sadd.s32 1, %s2417_s17  ;;  %s356_s22 = sadd.s32 1, %s2409_s15 }
   0x9   : > { %p43_p0 = scmp.ge.s32.totalorder %s41_s21, 2  ;;  %p366_p1 = scmp.ne.s32.totalorder %s2409_s15, %s2405_s30 }
   0xa   : > { %p367_p2 = scmp.eq.s32.totalorder %s1785_s19, 1  ;;  %p372_p3 = scmp.ne.s32.totalorder %s2405_s30, %s2401_s29 }
   0xb   : > { %s3125_s21 = smov (%p43_p0, %s41_s21), 0  ;;  %p373_p5 = scmp.eq.s32.totalorder %s1786_s20, 1 }
   0xc   : > { %3093 = sst [smem:[#allocation17_spill]] %s3125_s21  ;;  %p2608_p4 = por %p367_p2, %p366_p1 }
   0xd   : > { %s351_s24 = ssub.s32 %s2417_s17, %s3125_s21  ;;  %p1787_p6 = scmp.ge.s32.totalorder %s2421_s18, 1 }
   0xe   : > { %s3094_s23 = scalar_select %p2608_p4, 1, 0 }
   0xf   : > { %p354_p7 = scmp.eq.s32.totalorder %s351_s24, 0  ;;  %p2615_p8 = por %p373_p5, %p372_p3 }
  0x10   : > { %p380_p9 = scmp.lt.s32.totalorder %s2421_s18, 3  ;;  %p2627_p11 = scmp.eq.s32.totalorder %s1785_s19, 0 }
  0x11   : > { %s3095_s25 = scalar_select %p2615_p8, 1, 0 }
  0x12   : > { %s2621_s26 = scalar_select %p354_p7, %s2409_s15, %s356_s22  }
  0x13   : > { %3096 = sst [smem:[#allocation18_spill]] %s3095_s25  ;;  %p2623_p10 = pnand %p1787_p6, %p380_p9 }
  0x14   : > { %3097 = sst [smem:[#allocation19_spill]] %s2621_s26  ;;  %s2475_s20 = smov [#allocation6]  }
  0x15   : > { %s3099_s28 = scalar_select %p2627_p11, 1, 0 }
  0x16   : > { %p2000_p12 = pneg %p2623_p10  ;;  %s414_s24 = sshll.u32 %s2475_s20, 4  ;;  %s415_s24 = int_to_ptr.vmem [resolvable:$true] %s414_s24 }
  0x17   : > { %s2476_s21 = smov [#allocation9]   ;;  %s2244_s19 = scalar_lea.vmem %s415_s24, 16 }
  0x18   : > { %s428_s17 = sshll.u32 %s2476_s21, 4  ;;  %p2635_p13 = pnand %p2627_p11, %p2000_p12  ;;  %s429_s17 = int_to_ptr.vmem [resolvable:$true] %s428_s17 }
  0x19   : > { %p2245_p1 = scmp.ne.s32.totalorder %s415_s24, %s2244_s19  ;;  %s2251_s20 = scalar_lea.vmem %s415_s24, 32 }
  0x1a   : > { %p2235_p0 = pneg %p2635_p13  ;;  %p2252_p5 = scmp.lt.s32.totalorder %s415_s24, %s415_s24 }
  0x1b   : > { %p2253_p6 = scmp.lt.s32.totalorder %s2251_s20, %s2244_s19 }
  0x1c   : > { %p2247_p2 = pnand %p2245_p1, %p2235_p0 }
  0x1d   : > { %p2254_p7 = por %p2253_p6, %p2252_p5 }
  0x1e   : > { %p2248_p3 = pneg %p2247_p2 }
  0x20   : > { %p2255_p9 = pnand %p2254_p7, %p2248_p3 }
  0x22   : > { %2258 = shalt.err (!%p2255_p9)
}
  0x23   : > { %2003 = dma.hbm_to_vmem [thread:$0]  (!%p2635_p13), %s3078_s9, 16, %s415_s24, [#allocation7]  }
  0x24   : > { %s2270_s15 = scalar_lea.vmem %s429_s17, 16  ;;  %s2277_s25 = scalar_lea.vmem %s429_s17, 32 }
  0x25   : > { %p2271_p12 = scmp.ne.s32.totalorder %s429_s17, %s2270_s15  ;;  %p2278_p2 = scmp.lt.s32.totalorder %s429_s17, %s429_s17 }
  0x26   : > { %p2279_p4 = scmp.lt.s32.totalorder %s2277_s25, %s2270_s15 }
  0x27   : > { %p2273_p8 = pnand %p2271_p12, %p2235_p0 }
  0x28   : > { %p2280_p11 = por %p2279_p4, %p2278_p2 }
  0x29   : > { %p2274_p1 = pneg %p2273_p8 }
  0x2b   : > { %p2281_p5 = pnand %p2280_p11, %p2274_p1 }
  0x2d   : > { %2284 = shalt.err (!%p2281_p5)
}
  0x2e   : > { %2006 = dma.hbm_to_vmem [thread:$0]  (!%p2635_p13), %s3080_s11, 16, %s429_s17, [#allocation10]  }
  0x2f   : > { %464 = sbr.rel (%p2623_p10) target bundleno = 2356 (0x934), region = 76  ;;  %p3101_p3 = scmp.ne.s32.totalorder (!%p2623_p10), %s3099_s28, 0 }
  0x34   : > { %2388 = dma.done.wait (%p3101_p3), [#allocation7], 16  }
  0x35   : > { %2390 = vsyncadd (%p3101_p3), [#allocation7], 4294967280 }
  0x36   : > { %2392 = dma.done.wait (%p3101_p3), [#allocation10], 16  }
  0x37   : > { %2394 = vsyncadd (%p3101_p3), [#allocation10], 4294967280  ;;  %p520_p4 = scmp.lt.s32.totalorder %s2413_s16, 1  ;;  %vm541_vm0 = vcmask 261120   ;;  %v2185_v4 = vld [vmem:[%s3073_s4 + $0x8] sm:$0xff]   ;;  %s2477_s20 = smov 96   ;;  %v557_v17 = vlaneseq }
  0x38   : > { %v2186_v15 = vld [vmem:[%s3073_s4] sm:$0xff]   ;;  %v2187_v16 = vld [vmem:[%s3073_s4 + $0x8] sm:$0xff]   ;;  %v2478_v19 = vmov 0.0   ;;  %vm2479_vm1 = vmmov 0   ;;  %vm643_vm2 = vcmask 60416   ;;  %s2480_s22 = smov 112  }
  0x39   : > { %s521_s15 = scalar_select %p520_p4, %s2413_s16, 1  ;;  %1898 = vmatprep.subr.bf16.mxu1 %v2478_v19  ;;  %1890 = vmatprep.subr.bf16.mxu0 %v2478_v19  ;;  %v2700_v20 = vshrl.u32 %v557_v17, 7  ;;  %v2188_v21 = vld [vmem:[%s3073_s4] sm:$0xff]   ;;  %v2725_v54 = vand.u32 127, %v557_v17  ;;  %v2768_v17 = vmov -1e+30  }
  0x3a   : > { %1899 = vmatpush3.bf16.msra.mxu1 %v2187_v16  ;;  %1902 = vmatprep.mubr.msk.bf16.mxu1 %vm2479_vm1, %v2478_v19  ;;  %v1852_v22 = vld [vmem:[%s3074_s5] ss:$0 sm:$0xff]  ;;  %s2482_s28 = smov 104   ;;  %s2483_s19 = smov 88   ;;  %v2766_v16 = vmov -1e+30  }
  0x3b   : > { %s1795_s17 = sshll.u32 %s521_s15, 3  ;;  %1900 = vmatprep.subr.bf16.mxu1 %v2478_v19  ;;  %1894 = vmatprep.mubr.msk.bf16.mxu0 %vm2479_vm1, %v2478_v19  ;;  %v1850_v31 = vld [vmem:[%s3071_s2] ss:$0 sm:$0xff]  ;;  %s2484_s15 = smov 80  }
  0x3c   : > { %s526_s27 = scalar_lea.vmem %s3069_s0, %s1795_s17  ;;  %s530_s21 = scalar_lea.vmem %s3070_s1, %s1795_s17  ;;  %v1851_v33 = vld [vmem:[%s3072_s3] ss:$0 sm:$0xff] }
  0x3d   : > { %v2675_v0 = vld [vmem:[%s526_s27] sm:$0xff]  ;;  %s517_s27 = sand.u32 1, %s2405_s30   ;;  %s2485_s17 = smov 72  }
  0x3e   : > { %v540_v1 = vld [vmem:[%s530_s21] sm:$0xff]  ;;  %v683_v2 = vsel %vm541_vm0, %v2675_v0, 0.0  ;;  %s2697_s24 = sshll.u32 %s517_s27, 3  ;;  %1901 = vmatpush3.bf16.msra.mxu1 %v2188_v21  ;;  %s2481_s21 = smov 120  }
  0x3f   : > { %684 = vadd.xlane.f32.xlu0 %v683_v2  ;;  %v542_v3 = vsel %vm541_vm0, %v540_v1, 0.0  ;;  %s2772_s25 = smov 0  }
  0x43   : > { %543 = vadd.xlane.f32.xlu0 %v542_v3 }
  0x59   : > { %592 = vrot.lane.b32.xlu0 %v2185_v4, %s2477_s20 }
  0xc8   : > { %v685_v5 = vpop.xlane.xlu0 %684 }
  0xc9   : > { %v687_v6 = vmul.f32 0.03125, %v685_v5 }
  0xcb   : > { %v688_v7 = vsub.f32 %v2675_v0, %v687_v6 }
  0xcc   : > { %v544_v8 = vpop.xlane.xlu0 %543 }
  0xcd   : > { %v546_v9 = vmul.f32 0.03125, %v544_v8  ;;  %v689_v10 = vmul.f32 %v688_v7, %v688_v7  ;;  %v2750_v8 = vmov 0.0  }
  0xcf   : > { %v547_v11 = vsub.f32 %v540_v1, %v546_v9  ;;  %v690_v12 = vsel %vm541_vm0, %v689_v10, 0.0  ;;  %v2752_v9 = vmov 0.0   ;;  %v2754_v10 = vmov 0.0  }
  0xd0   : > { %691 = vadd.xlane.f32.xlu1 %v690_v12  ;;  %v593_v18 = vpop.permute.xlu0 %592  ;;  %v2758_v12 = vmov 0.0  }
  0xd1   : > { %v548_v13 = vmul.f32 %v547_v11, %v547_v11  ;;  %1891 = vmatpush3.bf16.msra.mxu0 %v593_v18  ;;  %v2770_v18 = vmov -1e+30  }
  0xd2   : > { %1892 = vmatprep.subr.bf16.mxu0 %v2478_v19 }
  0xd3   : > { %v549_v14 = vsel %vm541_vm0, %v548_v13, 0.0  ;;  %v2760_v13 = vmov 0.0  }
  0xd4   : > { %550 = vadd.xlane.f32.xlu1 %v549_v14  ;;  %v2762_v14 = vmov 0.0  }
  0xe5   : > { %590 = vrot.lane.b32.xlu1 %v2186_v15, %s2477_s20  ;;  %v2764_v15 = vmov -1e+30  }
  0xe9   : > { %596 = vrot.lane.b32.xlu1 %v1852_v22, %s2477_s20 }
 0x159   : > { %v692_v23 = vpop.xlane.xlu1 %691 }
 0x15a   : > { %v693_v24 = vmul.f32 0.03125, %v692_v23 }
 0x15c   : > { %v694_v25 = vadd.f32 1e-05, %v693_v24 }
 0x15d   : > { %v551_v26 = vpop.xlane.xlu1 %550 }
 0x15e   : > { %2189 = vrsqrt.f32 %v694_v25  ;;  %v552_v27 = vmul.f32 0.03125, %v551_v26 }
 0x160   : > { %v553_v28 = vadd.f32 1e-05, %v552_v27 }
 0x161   : > { %v591_v29 = vpop.permute.xlu1 %590 }
 0x162   : > { %2191 = vrsqrt.f32 %v553_v28  ;;  %1893 = vmatpush3.bf16.msra.mxu0 %v591_v29 }
 0x165   : > { %v597_v45 = vpop.permute.xlu1 %596 }
 0x16b   : > { %v2190_v30 = vpop.eup %2189 }
 0x16c   : > { %v696_v32 = vmul.f32 %v2190_v30, %v688_v7  ;;  %v2748_v7 = vmov 0.0  }
 0x16e   : > { %v703_v34 = vmul.f32 %v1850_v31, %v696_v32 }
 0x16f   : > { %v2192_v35 = vpop.eup %2191 }
 0x170   : > { %v710_v36 = vadd.f32 %v1851_v33, %v703_v34  ;;  %v555_v37 = vmul.f32 %v2192_v35, %v547_v11  ;;  %v2756_v11 = vmov 0.0  }
 0x172   : > { %v711_v38 = vpack.c.bf16 %v710_v36, %v710_v36  ;;  %v562_v39 = vmul.f32 %v1850_v31, %v555_v37 }
 0x174   : > { %1903 = vmatmul.mubr.msk.bf16.vlgmr.msra.gmra.mxu1 %vm541_vm0, %v711_v38  ;;  %v569_v40 = vadd.f32 %v1851_v33, %v562_v39 }
 0x176   : > { %v570_v41 = vpack.c.bf16 %v569_v40, %v569_v40 }
 0x178   : > { %1895 = vmatmul.mubr.msk.bf16.vlgmr.msra.gmra.mxu0 %vm541_vm0, %v570_v41 }
 0x234   : > { %v771_v42 = vpop.f32.mrf.mxu1 }
 0x235   : > { %v772_v43 = vadd.f32 %v1852_v22, %v771_v42 }
 0x236   : > { %v1904_v44 = vpop.f32.mrf.mxu1 }
 0x237   : > { %v777_v46 = vpack.c.bf16 %v772_v43, %v772_v43 }
 0x238   : > { %v774_v47 = vpop.f32.mrf.mxu1  ;;  %v636_v48 = vpop.f32.mrf.mxu0 }
 0x239   : > { %779 = vst.msk [vmem:[#allocation4] sm:$0xf] %vm643_vm2, %v777_v46  ;;  %v637_v49 = vadd.f32 %v636_v48, %v597_v45  ;;  %788 = vrot.lane.b32.xlu0 %v777_v46, %s2480_s22  ;;  %783 = vrot.lane.b32.xlu1 %v777_v46, %s2481_s21 }
 0x23a   : > { %v1896_v50 = vpop.f32.mrf.mxu0  ;;  %v1905_v51 = vpop.f32.mrf.mxu1 }
 0x23b   : > { %v642_v52 = vpack.c.bf16 %v637_v49, %v637_v49 }
 0x23c   : > { %v639_v53 = vpop.f32.mrf.mxu0 }
 0x23d   : > { %644 = vst.msk [vmem:[#allocation2] sm:$0xf] %vm643_vm2, %v642_v52  ;;  %793 = vrot.lane.b32.xlu1 %v777_v46, %s2482_s28  ;;  %648 = vrot.lane.b32.xlu0 %v642_v52, %s2477_s20  ;;  %s519_s20 = scalar_lea.vmem [#allocation11], %s2697_s24 }
 0x23e   : > { %v1897_v55 = vpop.f32.mrf.mxu0 }
 0x240   : > { %v2729_v56 = vld [vmem:[#allocation4] sm:$0xf] }
 0x241   : > { %652 = vrot.lane.b32.xlu1 %v642_v52, %s2481_s21  ;;  %657 = vrot.lane.b32.xlu0 %v642_v52, %s2483_s19 }
 0x245   : > { %662 = vrot.lane.b32.xlu1 %v642_v52, %s2480_s22  ;;  %667 = vrot.lane.b32.xlu0 %v642_v52, %s2484_s15 }
 0x249   : > { %672 = vrot.lane.b32.xlu1 %v642_v52, %s2482_s28  ;;  %677 = vrot.lane.b32.xlu0 %v642_v52, %s2485_s17 }
 0x2ab   : > { %v784_v57 = vpop.permute.xlu1 %783  ;;  %v789_v58 = vpop.permute.xlu0 %788 }
 0x2ac   : > { %787 = vst.msk [vmem:[#allocation4 + $0x4] sm:$0xf] %vm643_vm2, %v784_v57  ;;  %792 = vst.msk [vmem:[#allocation4 + $0x8] sm:$0xf] %vm643_vm2, %v789_v58 }
 0x2af   : > { %v794_v59 = vpop.permute.xlu1 %793  ;;  %v649_v60 = vpop.permute.xlu0 %648 }
 0x2b0   : > { %797 = vst.msk [vmem:[#allocation4 + $0xc] sm:$0xf] %vm643_vm2, %v794_v59  ;;  %651 = vst.msk [vmem:[#allocation3] sm:$0xf] %vm643_vm2, %v649_v60 }
 0x2b3   : > { %v2735_v61 = vld [vmem:[#allocation4 + $0x4] sm:$0xf]  ;;  %v2737_v62 = vld [vmem:[#allocation4 + $0x8] sm:$0xf]  ;;  %v653_v63 = vpop.permute.xlu1 %652  ;;  %v658_v1 = vpop.permute.xlu0 %657 }
 0x2b4   : > { %656 = vst.msk [vmem:[#allocation2 + $0x4] sm:$0xf] %vm643_vm2, %v653_v63  ;;  %661 = vst.msk [vmem:[#allocation3 + $0x4] sm:$0xf] %vm643_vm2, %v658_v1 }
 0x2b7   : > { %v2741_v2 = vld [vmem:[#allocation4 + $0xc] sm:$0xf]  ;;  %v663_v3 = vpop.permute.xlu1 %662  ;;  %v668_v4 = vpop.permute.xlu0 %667 }
 0x2b8   : > { %666 = vst.msk [vmem:[#allocation2 + $0x8] sm:$0xf] %vm643_vm2, %v663_v3  ;;  %671 = vst.msk [vmem:[#allocation3 + $0x8] sm:$0xf] %vm643_vm2, %v668_v4 }
 0x2bb   : > { %v673_v5 = vpop.permute.xlu1 %672  ;;  %v678_v6 = vpop.permute.xlu0 %677 }
 0x2bc   : > { %676 = vst.msk [vmem:[#allocation2 + $0xc] sm:$0xf] %vm643_vm2, %v673_v5  ;;  %681 = vst.msk [vmem:[#allocation3 + $0xc] sm:$0xf] %vm643_vm2, %v678_v6 }
 0x2bd LB: >> { %v2486_v21 = vmov 0.0   ;;  %s1845_s26 = sshll.u32 %s2473_s25, 4  ;;  %vm841_vm3 = vcmask 64512   ;;  %vm2487_vm4 = vmmov 0   ;;  %s1812_s21 = sshll.u32 %s2473_s25, 3  ;;  %vm1110_vm6 = vcmask 1043456   ;;  %s2473_s25 = sphi %s2772_s25, %s813_s25   ;;  %v2469_v18 = vphi %v2770_v18, %v3114_v18   ;;  %v2465_v17 = vphi %v2768_v17, %v3113_v17   ;;  %v2461_v16 = vphi %v2766_v16, %v3112_v16   ;;  %v2457_v15 = vphi %v2764_v15, %v3111_v15   ;;  %v2453_v14 = vphi %v2762_v14, %v3110_v14   ;;  %v2449_v13 = vphi %v2760_v13, %v3109_v13   ;;  %v2445_v12 = vphi %v2758_v12, %v3108_v12   ;;  %v2441_v11 = vphi %v2756_v11, %v3107_v11   ;;  %v2437_v10 = vphi %v2754_v10, %v3106_v10   ;;  %v2433_v9 = vphi %v2752_v9, %v3105_v9   ;;  %v2429_v8 = vphi %v2750_v8, %v3104_v8   ;;  %v2425_v7 = vphi %v2748_v7, %v3103_v7  }
 0x2be   : >> { %1906 = vmatprep.subr.bf16.mxu0 %v2486_v21  ;;  %1912 = vmatprep.subr.bf16.mxu1 %v2486_v21  ;;  %s830_s22 = scalar_lea.vmem [#allocation2], %s1845_s26  ;;  %v1031_v30 = vstv %s1812_s21  ;;  %v2488_v34 = vmov -1e+30   ;;  %s836_s28 = scalar_lea.vmem [#allocation3], %s1845_s26 }
 0x2bf   : >> { %1908 = vmatprep.mubr.msk.bf16.mxu0 %vm2487_vm4, %v2486_v21  ;;  %1914 = vmatprep.mubr.msk.bf16.mxu1 %vm2487_vm4, %v2486_v21  ;;  %v1032_v31 = vadd.s32 %v1031_v30, %v2725_v54  ;;  %s813_s25 = sadd.s32 1, %s2473_s25  }
 0x2c0   : >> { %p2902_p8 = scmp.ge.s32.totalorder %s813_s25, 1 }
 0x2c1   : >> { %vm1033_vm5 = vcmp.le.s32.totalorder %v1032_v31, %v2700_v20  ;;  %v2210_v20 = vld [vmem:[%s3075_s6] sm:$0xff] (%p2902_p8)   ;;  %s2490_s21 = smov (%p2902_p8), 24   ;;  %vm1315_vm7 = vcmask (%p2902_p8), 126016   ;;  %vm1323_vm8 = vcmask (%p2902_p8), 191616   ;;  %vm1331_vm9 = vcmask (%p2902_p8), 257216   ;;  %s1840_s17 = sshll.u32 (%p2902_p8), %s2413_s16, 7 }
 0x2c2   : >> { %v1034_v35 = vsel %vm1033_vm5, 0.0, %v2488_v34  ;;  %s1635_s25 = sshll.u32 (%p2902_p8), %s519_s20, 4  ;;  %s1621_s16 = scalar_lea.sflag (%p2902_p8), [#allocation8], %s517_s27  ;;  %s3020_s25 = int_to_ptr.vmem [resolvable:$true] %s1635_s25 }
 0x2c3   : >> { %v831_v22 = vld [vmem:[%s830_s22] sm:$0xf]  ;;  %v832_v23 = vld [vmem:[%s830_s22 + $0x4] sm:$0xf]  ;;  %v833_v26 = vld [vmem:[%s830_s22 + $0x8] sm:$0xf] }
 0x2c4   : >> { %v846_v24 = vsel %vm841_vm3, %v831_v22, 0  ;;  %v892_v25 = vsel %vm841_vm3, %v832_v23, 0  ;;  %v834_v27 = vld [vmem:[%s830_s22 + $0xc] sm:$0xf]  ;;  %v938_v28 = vsel %vm841_vm3, %v833_v26, 0  ;;  %s2489_s22 = smov (%p2902_p8), 8  }
 0x2c5   : >> { %1907 = vmatpush3.bf16.xpose.msra.mxu0 %v846_v24  ;;  %1913 = vmatpush3.bf16.xpose.msra.mxu1 %v892_v25  ;;  %v984_v29 = vsel %vm841_vm3, %v834_v27, 0  ;;  %v837_v4 = vld [vmem:[%s836_s28] sm:$0xf]  ;;  %v838_v6 = vld [vmem:[%s836_s28 + $0x4] sm:$0xf]  ;;  %p3115_p11 = scmp.ne.s32.totalorder (%p2902_p8), %s3094_s23, 0 }
 0x2c6   : >> { %1918 = vmatprep.subr.bf16.mxu0 %v2486_v21  ;;  %1924 = vmatprep.subr.bf16.mxu1 %v2486_v21  ;;  %v1112_v5 = vsel %vm1110_vm6, %v837_v4, 0  ;;  %v1158_v22 = vsel %vm1110_vm6, %v838_v6, 0  ;;  %v839_v23 = vld [vmem:[%s836_s28 + $0x8] sm:$0xf]  ;;  %v840_v25 = vld [vmem:[%s836_s28 + $0xc] sm:$0xf] }
 0x2c7   : >> { %v1204_v24 = vsel %vm1110_vm6, %v839_v23, 0  ;;  %v1250_v26 = vsel %vm1110_vm6, %v840_v25, 0  ;;  %s2491_s28 = smov (%p2902_p8), 16   ;;  %s2492_s19 = smov (%p2902_p8), [#allocation11]  }
 0x2c8   : > { %s2289_s15 = sshll.u32 (%p2902_p8), %s2492_s19, 4  ;;  %s2290_s15 = int_to_ptr.vmem [resolvable:$false] %s2289_s15 }
 0x2c9   : > { %p2292_p6 = scmp.lt.s32.totalorder (%p2902_p8), %s3020_s25, %s2290_s15 }
 0x2cc   : >> { %1909 = vmatmul.mubr.msk.bf16.vlgmr.msra.gmra.mxu0 %vm841_vm3, %v2729_v56  ;;  %1915 = vmatmul.mubr.msk.bf16.vlgmr.msra.gmra.mxu1 %vm841_vm3, %v2735_v61 }
 0x2cd   : >> { %1919 = vmatpush3.bf16.xpose.msra.mxu0 %v938_v28  ;;  %1925 = vmatpush3.bf16.xpose.msra.mxu1 %v984_v29 }
 0x2ce   : >> { %1920 = vmatprep.mubr.msk.bf16.mxu0 %vm2487_vm4, %v2486_v21  ;;  %1926 = vmatprep.mubr.msk.bf16.mxu1 %vm2487_vm4, %v2486_v21 }
 0x2cf   : >> { %1930 = vmatprep.subr.bf16.mxu0 %v2486_v21  ;;  %1936 = vmatprep.subr.bf16.mxu1 %v2486_v21 }
 0x2d4   : >> { %1921 = vmatmul.mubr.msk.bf16.vlgmr.msra.gmra.mxu0 %vm841_vm3, %v2737_v62  ;;  %1927 = vmatmul.mubr.msk.bf16.vlgmr.msra.gmra.mxu1 %vm841_vm3, %v2741_v2 }
 0x2d5   : >> { %1932 = vmatprep.mubr.msk.bf16.mxu0 %vm2487_vm4, %v2486_v21  ;;  %1938 = vmatprep.mubr.msk.bf16.mxu1 %vm2487_vm4, %v2486_v21 }
 0x2d6   : >> { %1931 = vmatpush3.bf16.msra.mxu0 %v1112_v5  ;;  %1937 = vmatpush3.bf16.msra.mxu1 %v1158_v22 }
 0x2d7   : >> { %1942 = vmatprep.subr.bf16.mxu0 %v2486_v21  ;;  %1948 = vmatprep.subr.bf16.mxu1 %v2486_v21 }
 0x38c   : >> { %v882_v32 = vpop.f32.mrf.mxu0  ;;  %v928_v33 = vpop.f32.mrf.mxu1 }
 0x38d   : >> { %v1026_v36 = vmul.f32 0.35355338, %v882_v32  ;;  %v1027_v37 = vmul.f32 0.35355338, %v928_v33 }
 0x38e   : >> { %v1910_v38 = vpop.f32.mrf.mxu0  ;;  %v1916_v39 = vpop.f32.mrf.mxu1 }
 0x38f   : >> { %v1035_v40 = vadd.f32 %v1034_v35, %v1026_v36  ;;  %v1036_v41 = vadd.f32 %v1034_v35, %v1027_v37 }
 0x390   : >> { %v885_v42 = vpop.f32.mrf.mxu0  ;;  %v931_v43 = vpop.f32.mrf.mxu1 }
 0x391   : >> { %v1039_v44 = vsel %vm841_vm3, %v1035_v40, -inf  ;;  %v1042_v47 = vsel %vm841_vm3, %v1036_v41, -inf }
 0x392   : >> { %v1917_v45 = vpop.f32.mrf.mxu1  ;;  %1040 = vmax.xlane.f32.xlu0 %v1039_v44  ;;  %v1911_v46 = vpop.f32.mrf.mxu0 }
 0x394   : >> { %v974_v48 = vpop.f32.mrf.mxu0  ;;  %v1020_v49 = vpop.f32.mrf.mxu1 }
 0x395   : >> { %v1028_v50 = vmul.f32 0.35355338, %v974_v48  ;;  %v1029_v51 = vmul.f32 0.35355338, %v1020_v49 }
 0x396   : >> { %v1928_v52 = vpop.f32.mrf.mxu1  ;;  %1043 = vmax.xlane.f32.xlu0 %v1042_v47  ;;  %v1922_v53 = vpop.f32.mrf.mxu0 }
 0x397   : >> { %v1037_v55 = vadd.f32 %v1034_v35, %v1028_v50  ;;  %v1038_v57 = vadd.f32 %v1034_v35, %v1029_v51 }
 0x398   : >> { %v977_v58 = vpop.f32.mrf.mxu0  ;;  %v1023_v59 = vpop.f32.mrf.mxu1 }
 0x399   : >> { %v1045_v60 = vsel %vm841_vm3, %v1037_v55, -inf  ;;  %v1048_v3 = vsel %vm841_vm3, %v1038_v57, -inf }
 0x39a   : >> { %v1929_v63 = vpop.f32.mrf.mxu1  ;;  %1046 = vmax.xlane.f32.xlu1 %v1045_v60  ;;  %v1923_v1 = vpop.f32.mrf.mxu0 }
 0x39e   : >> { %1049 = vmax.xlane.f32.xlu1 %v1048_v3 }
 0x41b   : >> { %v1041_v27 = vpop.xlane.xlu0 %1040 }
 0x41c   : >> { %v2858_v28 = vmax.f32 %v2469_v18, %v1041_v27  }
 0x41e   : >> { %v1055_v29 = vsub.f32 %v2469_v18, %v2858_v28  ;;  %v1067_v30 = vsub.f32 %v1035_v40, %v2858_v28 }
 0x41f   : >> { %v1044_v31 = vpop.xlane.xlu0 %1043 }
 0x420   : >> { %v1071_v32 = vmul.f32 1.442695, %v1067_v30  ;;  %v2864_v33 = vmax.f32 %v2465_v17, %v1044_v31  }
 0x422   : >> { %v1056_v34 = vsub.f32 %v2465_v17, %v2864_v33  ;;  %v1068_v35 = vsub.f32 %v1036_v41, %v2864_v33  ;;  %2193 = vpow2.f32 %v1071_v32 }
 0x423   : >> { %v1047_v36 = vpop.xlane.xlu1 %1046 }
 0x424   : >> { %v1073_v37 = vmul.f32 1.442695, %v1068_v35  ;;  %v2870_v38 = vmax.f32 %v2461_v16, %v1047_v36   ;;  %v1061_v58 = vmul.f32 1.442695, %v1056_v34 }
 0x426   : >> { %v1057_v18 = vsub.f32 %v2461_v16, %v2870_v38  ;;  %v1069_v39 = vsub.f32 %v1037_v55, %v2870_v38  ;;  %2195 = vpow2.f32 %v1073_v37 }
 0x427   : >> { %v1050_v40 = vpop.xlane.xlu1 %1049 }
 0x428   : >> { %v1075_v42 = vmul.f32 1.442695, %v1069_v39  ;;  %v2876_v43 = vmax.f32 %v2457_v15, %v1050_v40   ;;  %v1063_v59 = vmul.f32 1.442695, %v1057_v18 }
 0x42a   : >> { %v1058_v17 = vsub.f32 %v2457_v15, %v2876_v43  ;;  %v1070_v41 = vsub.f32 %v1038_v57, %v2876_v43  ;;  %2197 = vpow2.f32 %v1075_v42  ;;  %v1059_v57 = vmul.f32 1.442695, %v1055_v29 }
 0x42c   : >> { %v1077_v44 = vmul.f32 1.442695, %v1070_v41 }
 0x42e   : >> { %2199 = vpow2.f32 %v1077_v44 }
 0x42f   : >> { %v2194_v45 = vpop.eup %2193  ;;  %2201 = vpow2.f32 %v1059_v57  ;;  %v1820_v57 = vld [vmem:[%s3076_s7] ss:$0 sm:$0xff] (%p2902_p8) }
 0x430   : >> { %v1083_v46 = vsel %vm841_vm3, %v2194_v45, 0.0  ;;  %v1103_v16 = vpack.c.bf16 %v2194_v45, %v2194_v45  ;;  %2203 = vpow2.f32 %v1061_v58 }
 0x431   : >> { %1084 = vadd.xlane.f32.xlu0 %v1083_v46  ;;  %2205 = vpow2.f32 %v1063_v59 }
 0x432   : >> { %1933 = vmatmul.mubr.msk.bf16.vlgmr.msra.gmra.mxu0 %vm841_vm3, %v1103_v16 }
 0x433   : >> { %v2196_v47 = vpop.eup %2195  ;;  %1943 = vmatpush3.bf16.msra.mxu0 %v1204_v24  ;;  %1944 = vmatprep.mubr.msk.bf16.mxu0 %vm2487_vm4, %v2486_v21 }
 0x434   : >> { %v1086_v48 = vsel %vm841_vm3, %v2196_v47, 0.0  ;;  %v1104_v15 = vpack.c.bf16 %v2196_v47, %v2196_v47  ;;  %1970 = vmatprep.subr.bf16.mxu0 (%p2902_p8), %v2478_v19 }
 0x435   : >> { %1087 = vadd.xlane.f32.xlu1 %v1086_v48 }
 0x436   : >> { %1939 = vmatmul.mubr.msk.bf16.vlgmr.msra.gmra.mxu1 %vm841_vm3, %v1104_v15 }
 0x437   : >> { %v2198_v49 = vpop.eup %2197  ;;  %1949 = vmatpush3.bf16.msra.mxu1 %v1250_v26  ;;  %1950 = vmatprep.mubr.msk.bf16.mxu1 %vm2487_vm4, %v2486_v21  ;;  %v1065_v21 = vmul.f32 1.442695, %v1058_v17 }
 0x438   : >> { %v1089_v50 = vsel %vm841_vm3, %v2198_v49, 0.0  ;;  %v1105_v51 = vpack.c.bf16 %v2198_v49, %v2198_v49  ;;  %1954 = vmatprep.subr.bf16.mxu1 (%p2902_p8), %v2478_v19 }
 0x439   : >> { %1090 = vadd.xlane.f32.xlu0 %v1089_v50  ;;  %2207 = vpow2.f32 %v1065_v21 }
 0x43a   : >> { %1945 = vmatmul.mubr.msk.bf16.vlgmr.msra.gmra.mxu0 %vm841_vm3, %v1105_v51 }
 0x43b   : >> { %v2200_v52 = vpop.eup %2199  ;;  %1986 = vmatprep.mubr.msk.bf16.mxu0 (%p2902_p8), %vm2479_vm1, %v2478_v19 }
 0x43c   : >> { %v1092_v53 = vsel %vm841_vm3, %v2200_v52, 0.0  ;;  %v1106_v55 = vpack.c.bf16 %v2200_v52, %v2200_v52  ;;  %v2202_v60 = vpop.eup %2201 }
 0x43d   : >> { %1093 = vadd.xlane.f32.xlu1 %v1092_v53  ;;  %v1079_v63 = vmul.f32 %v2453_v14, %v2202_v60  ;;  %v2204_v1 = vpop.eup %2203  ;;  %v1099_v32 = vmul.f32 %v2437_v10, %v2202_v60 }
 0x43e   : >> { %1951 = vmatmul.mubr.msk.bf16.vlgmr.msra.gmra.mxu1 %vm841_vm3, %v1106_v55  ;;  %v1080_v5 = vmul.f32 %v2449_v13, %v2204_v1  ;;  %v2206_v6 = vpop.eup %2205  ;;  %v1100_v36 = vmul.f32 %v2433_v9, %v2204_v1 }
 0x43f   : >> { %v1081_v24 = vmul.f32 %v2445_v12, %v2206_v6  ;;  %v1101_v12 = vmul.f32 %v2429_v8, %v2206_v6  ;;  %1958 = vmatprep.mubr.msk.bf16.mxu1 (%p2902_p8), %vm2479_vm1, %v2478_v19 }
 0x446   : >> { %v2208_v25 = vpop.eup %2207 }
 0x447   : >> { %v1082_v29 = vmul.f32 %v2441_v11, %v2208_v25  ;;  %v1102_v45 = vmul.f32 %v2425_v7, %v2208_v25 }
 0x4ba   : >> { %v1085_v3 = vpop.xlane.xlu0 %1084 }
 0x4bb   : >> { %v1095_v4 = vadd.f32 %v1085_v3, %v1079_v63  }
 0x4be   : >> { %v1088_v22 = vpop.xlane.xlu1 %1087 }
 0x4bf   : >> { %v1096_v23 = vadd.f32 %v1088_v22, %v1080_v5  }
 0x4c1   : > { %2221 = vrcp.f32 (%p2902_p8), %v1096_v23 }
 0x4c2   : >> { %v1091_v26 = vpop.xlane.xlu0 %1090 }
 0x4c3   : >> { %v1097_v27 = vadd.f32 %v1091_v26, %v1081_v24   ;;  %v2211_v24 = vld [vmem:[%s3079_s10 + $0x8] sm:$0xff] (%p2902_p8)  }
 0x4c5   : > { %2223 = vrcp.f32 (%p2902_p8), %v1097_v27 }
 0x4c6   : >> { %v1094_v30 = vpop.xlane.xlu1 %1093 }
 0x4c7   : >> { %v1098_v31 = vadd.f32 %v1094_v30, %v1082_v29   ;;  %v1824_v30 = vld [vmem:[%s3077_s8] ss:$0 sm:$0xff] (%p2902_p8) }
 0x4c9   : > { %2225 = vrcp.f32 (%p2902_p8), %v1098_v31 }
 0x4ca   : > { %2227 = vrcp.f32 (%p2902_p8), %v1095_v4 }
 0x4ce   : > { %v2222_v54 = vpop.eup (%p2902_p8), %2221 }
 0x4d2   : > { %v2224_v56 = vpop.eup (%p2902_p8), %2223 }
 0x4d6   : > { %v2226_v62 = vpop.eup (%p2902_p8), %2225 }
 0x4f2   : >> { %v1148_v14 = vpop.f32.mrf.mxu0 }
 0x4f3   : >> { %v1292_v34 = vadd.f32 %v1148_v14, %v1099_v32   ;;  %v3110_v14 = vmov %v1095_v4  ;;  %v1825_v32 = vld [vmem:[#allocation6] ss:$0 sm:$0xff] (%p2902_p8) }
 0x4f4   : >> { %v1934_v35 = vpop.f32.mrf.mxu0 }
 0x4f6   : >> { %v1151_v13 = vpop.f32.mrf.mxu0  ;;  %v1194_v37 = vpop.f32.mrf.mxu1 }
 0x4f7   : >> { %v1293_v39 = vadd.f32 %v1194_v37, %v1100_v36   ;;  %v3109_v13 = vmov %v1096_v23  ;;  %v2213_v36 = vld [vmem:[%s3081_s12 + $0x38] sm:$0xff] (%p2902_p8)   ;;  %v2215_v37 = vld [vmem:[%s3081_s12 + $0x28] sm:$0xff] (%p2902_p8)  }
 0x4f8   : >> { %v1935_v18 = vpop.f32.mrf.mxu0  ;;  %v1940_v40 = vpop.f32.mrf.mxu1  ;;  %1971 = vmatpush3.bf16.msra.mxu0 (%p2902_p8), %v2213_v36  ;;  %v2214_v13 = vld [vmem:[%s3081_s12 + $0x30] sm:$0xff] (%p2902_p8)  }
 0x4f9   : >> { %v3114_v18 = vmov %v2858_v28  ;;  %v2209_v28 = vld [vmem:[%s3075_s6 + $0x8] sm:$0xff] (%p2902_p8)   ;;  %v1301_v61 = vmul.f32 (%p2902_p8), %v2222_v54, %v1293_v39  ;;  %1972 = vmatprep.subr.bf16.mxu0 (%p2902_p8), %v2478_v19  ;;  %v2218_v40 = vld [vmem:[%s3081_s12 + $0x10] sm:$0xff] (%p2902_p8)  }
 0x4fa   : >> { %v1197_v42 = vpop.f32.mrf.mxu1  ;;  %v1240_v17 = vpop.f32.mrf.mxu0  ;;  %1955 = vmatpush3.bf16.msra.mxu1 (%p2902_p8), %v2209_v28  ;;  %v2217_v18 = vld [vmem:[%s3081_s12 + $0x18] sm:$0xff] (%p2902_p8)  }
 0x4fb   : >> { %v1294_v41 = vadd.f32 %v1240_v17, %v1101_v12   ;;  %v3108_v12 = vmov %v1097_v27  ;;  %v3113_v17 = vmov %v2864_v33  ;;  %1956 = vmatprep.subr.bf16.mxu1 (%p2902_p8), %v2478_v19  ;;  %v2220_v42 = vld [vmem:[%s3081_s12] sm:$0xff] (%p2902_p8)  }
 0x4fc   : >> { %v1941_v11 = vpop.f32.mrf.mxu1  ;;  %v1946_v44 = vpop.f32.mrf.mxu0  ;;  %1973 = vmatpush3.bf16.msra.mxu0 (%p2902_p8), %v2214_v13  ;;  %v2219_v12 = vld [vmem:[%s3081_s12 + $0x8] sm:$0xff] (%p2902_p8)   ;;  %v1826_v17 = vld [vmem:[#allocation9] ss:$0 sm:$0xff] (%p2902_p8) }
 0x4fd   : >> { %v3104_v8 = vmov %v1294_v41  ;;  %v3107_v11 = vmov %v1098_v31  ;;  %v1302_v2 = vmul.f32 (%p2902_p8), %v2224_v56, %v1294_v41  ;;  %1974 = vmatprep.subr.bf16.mxu0 (%p2902_p8), %v2478_v19  ;;  %v1830_v56 = vld [vmem:[%s3082_s13] ss:$0 sm:$0xff] (%p2902_p8) }
 0x4fe   : >> { %v1243_v10 = vpop.f32.mrf.mxu0  ;;  %v1286_v46 = vpop.f32.mrf.mxu1  ;;  %1957 = vmatpush3.bf16.msra.mxu1 (%p2902_p8), %v2210_v20  ;;  %v1847_v8 = vpack.c.bf16 (%p2902_p8), %v1301_v61, %v1301_v61 }
 0x4ff   : >> { %v1295_v47 = vadd.f32 %v1286_v46, %v1102_v45   ;;  %v3106_v10 = vmov %v1292_v34  ;;  %1962 = vmatprep.subr.bf16.mxu1 (%p2902_p8), %v2478_v19 }
 0x500   : >> { %v1947_v16 = vpop.f32.mrf.mxu0  ;;  %v1952_v48 = vpop.f32.mrf.mxu1  ;;  %1312 = vrot.lane.b32.xlu0 (%p2902_p8), %v1847_v8, %s2489_s22  ;;  %1975 = vmatpush3.bf16.msra.mxu0 (%p2902_p8), %v2215_v37 }
 0x501   : >> { %v3103_v7 = vmov %v1295_v47  ;;  %v3112_v16 = vmov %v2870_v38  ;;  %815 = sbr.rel (!%p2902_p8) target bundleno = 701 (0x2bd), region = 145  ;;  %v1303_v33 = vmul.f32 (%p2902_p8), %v2226_v62, %v1295_v47  ;;  %1976 = vmatprep.subr.bf16.mxu0 (%p2902_p8), %v2478_v19 }
 0x502   : >> { %v1289_v9 = vpop.f32.mrf.mxu1  ;;  %v2228_v7 = vpop.eup (%p2902_p8), %2227 }
 0x503   : >> { %v3105_v9 = vmov %v1293_v39  ;;  %v1300_v38 = vmul.f32 (%p2902_p8), %v2228_v7, %v1292_v34  ;;  %v1849_v49 = vpack.c.bf16 (%p2902_p8), %v1303_v33, %v1303_v33  ;;  %v2216_v39 = vld [vmem:[%s3081_s12 + $0x20] sm:$0xff] (%p2902_p8)  }
 0x504   : >> { %v1953_v15 = vpop.f32.mrf.mxu1  ;;  %1977 = vmatpush3.bf16.msra.mxu0 (%p2902_p8), %v2216_v39 }
 0x505   : >> { %v3111_v15 = vmov %v2876_v43  ;;  %v1848_v43 = vpack.c.bf16 (%p2902_p8), %v1302_v2, %v1302_v2  ;;  %v1304_v50 = vpack.c.bf16 (%p2902_p8), %v1300_v38, %v1300_v38  ;;  %1328 = vrot.lane.b32.xlu1 (%p2902_p8), %v1849_v49, %s2490_s21  ;;  %1978 = vmatprep.subr.bf16.mxu0 (%p2902_p8), %v2478_v19  ;;  %s3018_s21 = scalar_lea.hbm (%p2902_p8), %s3083_s14, %s1840_s17  ;;  %s2291_s17 = scalar_lea.vmem (%p2902_p8), %s2290_s15, 256 }
 0x507   : > { %1308 = vst.msk [vmem:[#allocation5] sm:$0xf] %vm643_vm2, %v1304_v50  ;;  %1320 = vrot.lane.b32.xlu0 %v1848_v43, %s2491_s28  ;;  %s2285_s28 = scalar_lea.vmem %s3020_s25, 128 }
 0x508   : > { %1979 = vmatpush3.bf16.msra.mxu0 %v2217_v18  ;;  %p2286_p10 = scmp.ne.s32.totalorder %s3020_s25, %s2285_s28  ;;  %p2293_p7 = scmp.lt.s32.totalorder %s2291_s17, %s2285_s28 }
 0x509   : > { %1980 = vmatprep.subr.bf16.mxu0 %v2478_v19 }
 0x50a   : > { %p2287_p13 = pnand %p2286_p10, %p3115_p11  ;;  %p2294_p9 = por %p2293_p7, %p2292_p6 }
 0x50c   : > { %1981 = vmatpush3.bf16.msra.mxu0 %v2218_v40  ;;  %p2288_p0 = pneg %p2287_p13 }
 0x50d   : > { %1982 = vmatprep.subr.bf16.mxu0 %v2478_v19 }
 0x50e   : > { %p2295_p12 = pnand %p2294_p9, %p2288_p0 }
 0x510   : > { %1983 = vmatpush3.bf16.msra.mxu0 %v2219_v12 }
 0x511   : > { %1984 = vmatprep.subr.bf16.mxu0 %v2478_v19 }
 0x514   : > { %1985 = vmatpush3.bf16.msra.mxu0 %v2220_v42 }
 0x572   : > { %v1313_v51 = vpop.permute.xlu0 %1312 }
 0x573   : > { %1316 = vst.msk [vmem:[#allocation5] sm:$0xf] %vm1315_vm7, %v1313_v51 }
 0x577   : > { %v1329_v52 = vpop.permute.xlu1 %1328 }
 0x579   : > { %v1321_v53 = vpop.permute.xlu0 %1320 }
 0x57a   : > { %1324 = vst.msk [vmem:[#allocation5] sm:$0xf] %vm1323_vm8, %v1321_v53 }
 0x57b   : > { %1332 = vst.msk [vmem:[#allocation5] sm:$0xf] %vm1331_vm9, %v1329_v52 }
 0x582   : > { %v1333_v55 = vld [vmem:[#allocation5] sm:$0xf] }
 0x583   : > { %1959 = vmatmul.mubr.msk.bf16.vlgmr.msra.gmra.mxu1 %vm541_vm0, %v1333_v55 }
 0x584   : > { %1966 = vmatprep.mubr.msk.bf16.mxu1 %vm2479_vm1, %v2478_v19  ;;  %1963 = vmatpush3.bf16.msra.mxu1 %v2211_v24 }
 0x585   : > { %1964 = vmatprep.subr.bf16.mxu1 %v2478_v19 }
 0x643   : > { %v1394_v58 = vpop.f32.mrf.mxu1 }
 0x644   : > { %v1395_v59 = vadd.f32 %v1820_v57, %v1394_v58 }
 0x645   : > { %v1960_v21 = vpop.f32.mrf.mxu1 }
 0x646   : > { %v2960_v60 = vadd.f32 %v1395_v59, %v2675_v0  ;;  %v2212_v0 = vld [vmem:[%s3079_s10] sm:$0xff]  }
 0x647   : > { %v1397_v63 = vpop.f32.mrf.mxu1  ;;  %1965 = vmatpush3.bf16.msra.mxu1 %v2212_v0 }
 0x648   : > { %v1403_v1 = vsel %vm541_vm0, %v2960_v60, 0.0 }
 0x649   : > { %1404 = vadd.xlane.f32.xlu1 %v1403_v1  ;;  %v1961_v3 = vpop.f32.mrf.mxu1 }
 0x6d2   : > { %v1405_v4 = vpop.xlane.xlu1 %1404 }
 0x6d3   : > { %v1406_v5 = vmul.f32 0.03125, %v1405_v4 }
 0x6d5   : > { %v1407_v6 = vsub.f32 %v2960_v60, %v1406_v5 }
 0x6d7   : > { %v1408_v22 = vmul.f32 %v1407_v6, %v1407_v6 }
 0x6d9   : > { %v1409_v23 = vsel %vm541_vm0, %v1408_v22, 0.0 }
 0x6da   : > { %1410 = vadd.xlane.f32.xlu0 %v1409_v23 }
 0x763   : > { %v1411_v25 = vpop.xlane.xlu0 %1410 }
 0x764   : > { %v1412_v26 = vmul.f32 0.03125, %v1411_v25 }
 0x766   : > { %v1413_v27 = vadd.f32 1e-05, %v1412_v26 }
 0x768   : > { %2229 = vrsqrt.f32 %v1413_v27 }
 0x775   : > { %v2230_v29 = vpop.eup %2229 }
 0x776   : > { %v1415_v31 = vmul.f32 %v2230_v29, %v1407_v6 }
 0x778   : > { %v1422_v14 = vmul.f32 %v1824_v30, %v1415_v31 }
 0x77a   : > { %v1429_v34 = vadd.f32 %v1825_v32, %v1422_v14 }
 0x77c   : > { %v1430_v35 = vpack.c.bf16 %v1429_v34, %v1429_v34 }
 0x77e   : > { %1967 = vmatmul.mubr.msk.bf16.vlgmr.msra.gmra.mxu1 %vm541_vm0, %v1430_v35 }
 0x83e   : > { %v1491_v41 = vpop.f32.mrf.mxu1 }
 0x83f   : > { %v1492_v11 = vadd.f32 %v1826_v17, %v1491_v41 }
 0x840   : > { %v1968_v44 = vpop.f32.mrf.mxu1 }
 0x841   : > { %v1497_v45 = vmul.f32 %v1492_v11, %v1492_v11 }
 0x842   : > { %v1494_v10 = vpop.f32.mrf.mxu1 }
 0x843   : > { %v1498_v46 = vmul.f32 %v1497_v45, %v1492_v11 }
 0x844   : > { %v1969_v47 = vpop.f32.mrf.mxu1 }
 0x845   : > { %v1499_v16 = vmul.f32 0.044715, %v1498_v46 }
 0x847   : > { %v1500_v48 = vadd.f32 %v1499_v16, %v1492_v11 }
 0x849   : > { %v1501_v9 = vmul.f32 0.7978846, %v1500_v48 }
 0x84b   : > { %2231 = vtanh.f32 %v1501_v9 }
 0x858   : > { %v2232_v15 = vpop.eup %2231 }
 0x859   : > { %v1503_v28 = vadd.f32 1.0, %v2232_v15 }
 0x85b   : > { %v1504_v20 = vmul.f32 0.5, %v1503_v28 }
 0x85d   : > { %v1505_v19 = vmul.f32 %v1504_v20, %v1492_v11 }
 0x85f   : > { %v1506_v54 = vpack.c.bf16 %v1505_v19, %v1505_v19 }
 0x861   : > { %1987 = vmatmul.mubr.bf16.vlgmr.msra.gmra.mxu0 %v1506_v54 }
 0x921   : > { %v1612_v61 = vpop.f32.mrf.mxu0 }
 0x922   : > { %v1613_v62 = vadd.f32 %v1830_v56, %v1612_v61 }
 0x923   : > { %v1988_v2 = vpop.f32.mrf.mxu0 }
 0x924   : > { %v1618_v7 = vadd.f32 %v1613_v62, %v2960_v60 }
 0x925   : > { %v1615_v8 = vpop.f32.mrf.mxu0 }
 0x926   : > { %1619 = vst.msk [vmem:[%s519_s20] sm:$0xff] %vm541_vm0, %v1618_v7 }
 0x927   : > { %v1989_v33 = vpop.f32.mrf.mxu0 }
 0x928   : > { %2298 = shalt.err (!%p2295_p12)
}
 0x929   : > { %s2299_s24 = scalar_lea.hbm %s3018_s21, 128  ;;  %s2303_s26 = scalar_lea.hbm %s3083_s14, 256 }
 0x92a   : > { %p2300_p1 = scmp.ne.s32.totalorder %s3018_s21, %s2299_s24  ;;  %p2304_p3 = scmp.lt.s32.totalorder %s3018_s21, %s3083_s14 }
 0x92b   : > { %p2305_p4 = scmp.lt.s32.totalorder %s2303_s26, %s2299_s24 }
 0x92c   : > { %p2301_p2 = pnand %p2300_p1, %p3115_p11 }
 0x92d   : > { %p2306_p8 = por %p2305_p4, %p2304_p3 }
 0x92e   : > { %p2302_p5 = pneg %p2301_p2 }
 0x930   : > { %p2307_p10 = pnand %p2306_p8, %p2302_p5 }
 0x932   : > { %2310 = shalt.err (!%p2307_p10)
}
 0x933   : > { %1998 = dma.vmem_to_hbm [thread:$0]  (%p3115_p11), %s3020_s25, 128, %s3018_s21, %s1621_s16  }
 0x934 PF: > { %s3116_s28 = sld [smem:[#allocation18_spill]]  ;;  %p2015_p13 = scmp.ge.s32.totalorder %s2421_s18, 2 }
 0x935   : > { %s1647_s15 = sand.u32 1, %s2401_s29  }
 0x936   : > { %s1648_s17 = scalar_lea.sflag [#allocation8], %s1647_s15 }
 0x93a   : > { %p3117_p0 = scmp.ne.s32.totalorder %s3116_s28, 0 }
 0x93c   : > { %p2008_p6 = pnand %p2015_p13, %p3117_p0 }
 0x93e   : > { %p2009_p7 = pneg %p2008_p6 }
 0x940   : > { %2396 = dma.done.wait (%p2009_p7), %s1648_s17, 128  }
 0x941   : > { %2398 = vsyncadd (%p2009_p7), %s1648_s17, 4294967168  ;;  %s29_s18 = sadd.s32 1, %s2421_s18   ;;  %s3118_s23 = sld [smem:[#allocation15_spill]] }
 0x942   : > { %p26_p9 = scmp.ge.s32.totalorder %s29_s18, 4   ;;  %s3119_s15 = sld [smem:[#allocation19_spill]] }
 0x943   : > { %s3120_s16 = sld [smem:[#allocation16_spill]]  ;;  %s3122_s29 = smov %s2405_s30 }
 0x944   : > { %s3121_s17 = sld [smem:[#allocation17_spill]]  ;;  %28 = sbr.rel (!%p26_p9) target bundleno = 6 (0x6), region = 156 }
 0x947   : > { %s3123_s30 = smov %s3118_s23 }
 0x949   :  { %1653 = vsyncpa [#allocation7], 1 }
 0x94a   :  { %1655 = vsyncpa [#allocation7 + $0x1], 1 }
 0x94b   :  { %1656 = vsyncpa [#allocation10], 1 }
 0x94c   :  { %1657 = vsyncpa [#allocation8], 1 }
 0x94d   :  { %1659 = vsyncpa [#allocation8 + $0x1], 1 }

</bundles_post_ra>
